<compile_context>
chip_gen: v7x
topology: tpu7x:2x2x1
jax: 0.10.0
libtpu: 0.0.40
codegen_flags: <defaults>
</compile_context>

<pallas_src>
import functools

import jax
import jax.numpy as jnp
from jax import lax
from jax.experimental import pallas as pl
from jax.experimental.pallas import tpu as pltpu


# -----------------------------------------------------------------------------
# Small helpers
# -----------------------------------------------------------------------------
def _round_up(x, m):
    return (x + m - 1) // m * m


def _vmem_limit_bytes():
    # Generation-aware scoped-VMEM budget: half of physical VMEM, clamped to
    # [32 MiB, 64 MiB] (64 MiB on v5e/v6e's 128 MiB, 32 MiB on v7x's 64 MiB).
    try:
        cap = getattr(pltpu.get_tpu_info(), "vmem_capacity_bytes", None)
    except Exception:  # pragma: no cover - info query unavailable
        cap = None
    if not cap:
        return 32 * 1024 * 1024
    return int(min(64 * 1024 * 1024, max(32 * 1024 * 1024, cap // 2)))


def _compiler_params(n_axes):
    return pltpu.CompilerParams(
        dimension_semantics=("parallel",) * n_axes,
        vmem_limit_bytes=_vmem_limit_bytes())


def _pick_row_block(n, ho, wo, cp):
    # Output-row tile TH for the fused conv.  TH must divide Ho; prefer >= 4
    # grid steps (2 per TensorCore on v7x megacore) and keep the f32
    # accumulator (TH*Wo, Cp) under ~4 MiB of VMEM.
    max_rows = max(256, min(4096, (4 * 1024 * 1024) // (4 * cp)))
    divisors = [d for d in range(ho, 0, -1) if ho % d == 0]
    for min_steps in (4, 2, 1):
        for th in divisors:
            if th * wo <= max_rows and n * (ho // th) >= min_steps:
                return th
    return 1


def _pick_rows_tile(m):
    # Pass B is pure elementwise / store-bound: use big row tiles, but keep
    # >= 4 grid steps when possible.
    for t in (2048, 1024, 512, 256, 128, 64, 32, 16, 8):
        if m >= 4 * t:
            return t
    return _round_up(max(m, 1), 8)


def _pick_tile_m(m):
    # im2col fallback GEMM tile: prefer >= 4 tiles, then >= 2.
    for want in (4, 2):
        for tm in (512, 256, 128, 64, 32, 16):
            if m >= want * tm:
                return tm
    return _round_up(max(m, 1), 16)


# -----------------------------------------------------------------------------
# Pallas kernels
# -----------------------------------------------------------------------------
def _conv3x3_s1_kernel(xb_ref, xh1_ref, xh2_ref, w_ref, y_ref, s_ref,
                       win_ref, acc_ref, *, wo):
    """3x3 stride-1 conv on a halo'd row tile: 9-tap accumulated MXU GEMM.

    xb:  (1, TH, Wp2, Cinp)  body rows of the spatially padded input
    xh1: (1, 1,  Wp2, Cinp)  halo row TH
    xh2: (1, 1,  Wp2, Cinp)  halo row TH+1
    w:   (9, Cinp, Cp)       per-tap weight matrices (kh-major)
    y:   (1, 1, TH*Wo, Cp)   bf16 conv output tile (lane-dense Cp)
    s:   (1, 1, 2, Cp)       per-tile BN partials (sum / sum of squares)
    """
    th = xb_ref.shape[1]

    # Assemble the (TH+2)-row halo'd window once in VMEM.
    win_ref[0:th, :, :] = xb_ref[0]
    win_ref[th, :, :] = xh1_ref[0, 0]
    win_ref[th + 1, :, :] = xh2_ref[0, 0]

    # Unrolled 9-tap accumulated GEMM; the im2col tap only ever lives in VMEM.
    for kh in range(3):
        for kw in range(3):
            a = win_ref[kh:kh + th, kw:kw + wo, :]           # (TH, Wo, Cinp)
            a = a.reshape(th * wo, a.shape[-1])              # (TH*Wo, Cinp)
            contrib = jnp.dot(a, w_ref[kh * 3 + kw],
                              preferred_element_type=jnp.float32)
            if kh == 0 and kw == 0:
                acc_ref[...] = contrib
            else:
                acc_ref[...] += contrib

    acc = acc_ref[...]
    y_ref[0, 0] = acc.astype(y_ref.dtype)                    # bf16 writeback
    ssum = jnp.sum(acc, axis=0, keepdims=True)               # (1, Cp) f32
    ssq = jnp.sum(acc * acc, axis=0, keepdims=True)          # (1, Cp) f32
    s_ref[0, 0] = jnp.concatenate([ssum, ssq], axis=0)


def _gemm_stats_kernel(p_ref, w_ref, y_ref, s_ref):
    # im2col fallback (stride != 1): (TM, Kp) @ (Kp, Cp) on the MXU.
    acc = jnp.dot(p_ref[...], w_ref[...], preferred_element_type=jnp.float32)
    y_ref[...] = acc.astype(y_ref.dtype)
    ssum = jnp.sum(acc, axis=0, keepdims=True)
    ssq = jnp.sum(acc * acc, axis=0, keepdims=True)
    s_ref[0] = jnp.concatenate([ssum, ssq], axis=0)


def _bn_relu_kernel(y_ref, c_ref, o_ref, *, inv_m, eps):
    # Folded BatchNorm (training batch stats) + ReLU.  c = [ssum, ssq, g, b].
    c = c_ref[...]
    mean = c[0:1, :] * inv_m
    var = jnp.maximum(c[1:2, :] * inv_m - mean * mean, 0.0)
    scale = c[2:3, :] * lax.rsqrt(var + eps)
    shift = c[3:4, :] - mean * scale
    y = y_ref[...].astype(jnp.float32) * scale + shift
    o_ref[...] = jnp.maximum(y, 0.0).astype(o_ref.dtype)


# -----------------------------------------------------------------------------
# Pass B: BN (folded) + ReLU over the flattened (M, Cp) conv output
# -----------------------------------------------------------------------------
def _bn_relu(y2d, stats, gamma, beta, *, cout, m_true, eps, out_dtype):
    m, cp = y2d.shape
    moments = jnp.sum(stats, axis=0)                          # (2, Cp) f32
    gb = jnp.stack(
        [jnp.pad(gamma.astype(jnp.float32), (0, cp - cout)),
         jnp.pad(beta.astype(jnp.float32), (0, cp - cout))], axis=0)
    coeffs = jnp.concatenate([moments, gb], axis=0)           # (4, Cp)

    tb = _pick_rows_tile(m)
    m_pad = _round_up(m, tb)
    if m_pad != m:
        y2d = jnp.pad(y2d, ((0, m_pad - m), (0, 0)))

    kernel = functools.partial(_bn_relu_kernel, inv_m=1.0 / m_true, eps=eps)
    out = pl.pallas_call(
        kernel,
        out_shape=jax.ShapeDtypeStruct((m_pad, cp), out_dtype),
        grid_spec=pltpu.PrefetchScalarGridSpec(
            num_scalar_prefetch=0,
            grid=(m_pad // tb,),
            in_specs=[pl.BlockSpec((tb, cp), lambda i: (i, 0)),
                      pl.BlockSpec((4, cp), lambda i: (0, 0))],
            out_specs=pl.BlockSpec((tb, cp), lambda i: (i, 0))),
        compiler_params=_compiler_params(1),
    )(y2d, coeffs)
    return out[:m]


# -----------------------------------------------------------------------------
# Fused path: 3x3 stride-1 conv + BN + ReLU without HBM im2col
# -----------------------------------------------------------------------------
def _conv3x3_s1_bn_relu(x_nhwc, w_oihw, gamma, beta, *, eps, out_dtype):
    n, h, w, cin = x_nhwc.shape
    cout = w_oihw.shape[0]
    ho, wo = h, w                              # k=3, pad=1, stride=1
    cinp = _round_up(cin, 8)
    cp = _round_up(cout, 128)
    wp2 = _round_up(w + 2, 8)
    th = _pick_row_block(n, ho, wo, cp)
    nh = ho // th

    # Spatially padded NHWC activations in bf16 (~1.2x the raw bytes; replaces
    # the 9x im2col materialization).
    xp = jnp.pad(x_nhwc.astype(jnp.bfloat16),
                 ((0, 0), (1, 1), (1, wp2 - (w + 2) + 1), (0, cinp - cin)))

    # (O,I,3,3) -> (3,3,I,O) -> (9, Cinp, Cp) bf16, tap index = kh*3 + kw.
    w9 = jnp.transpose(w_oihw, (2, 3, 1, 0)).reshape(9, cin, cout)
    w9 = jnp.pad(w9, ((0, 0), (0, cinp - cin), (0, cp - cout))).astype(jnp.bfloat16)

    kernel = functools.partial(_conv3x3_s1_kernel, wo=wo)
    y, stats = pl.pallas_call(
        kernel,
        out_shape=(jax.ShapeDtypeStruct((n, nh, th * wo, cp), jnp.bfloat16),
                   jax.ShapeDtypeStruct((n, nh, 2, cp), jnp.float32)),
        grid_spec=pltpu.PrefetchScalarGridSpec(
            num_scalar_prefetch=0,
            grid=(n, nh),
            in_specs=[
                # Body rows [hi*TH, hi*TH+TH) of the padded image.
                pl.BlockSpec((1, th, wp2, cinp),
                             lambda ni, hi: (ni, hi, 0, 0)),
                # Halo rows hi*TH+TH and hi*TH+TH+1 (block size 1 -> block
                # index == element row index; always in bounds of H+2 rows).
                pl.BlockSpec((1, 1, wp2, cinp),
                             lambda ni, hi: (ni, hi * th + th, 0, 0)),
                pl.BlockSpec((1, 1, wp2, cinp),
                             lambda ni, hi: (ni, hi * th + th + 1, 0, 0)),
                # Grid-invariant weight: single-buffered (fetched once).
                pl.BlockSpec((9, cinp, cp), lambda ni, hi: (0, 0, 0),
                             pipeline_mode=pl.Buffered(1)),
            ],
            out_specs=[
                pl.BlockSpec((1, 1, th * wo, cp), lambda ni, hi: (ni, hi, 0, 0)),
                pl.BlockSpec((1, 1, 2, cp), lambda ni, hi: (ni, hi, 0, 0)),
            ],
            scratch_shapes=[pltpu.VMEM((th + 2, wp2, cinp), jnp.bfloat16),
                            pltpu.VMEM((th * wo, cp), jnp.float32)]),
        compiler_params=_compiler_params(2),
    )(xp, xp, xp, w9)

    out = _bn_relu(y.reshape(n * ho * wo, cp), stats.reshape(-1, 2, cp),
                   gamma, beta, cout=cout, m_true=n * ho * wo, eps=eps,
                   out_dtype=out_dtype)
    return out.reshape(n, ho, wo, cp)[..., :cout]


# -----------------------------------------------------------------------------
# Fallback path (stride != 1): HBM im2col GEMM + shared BN/ReLU pass
# -----------------------------------------------------------------------------
def _conv_bn_relu_im2col(x_nhwc, w_oihw, gamma, beta, *, stride, eps, out_dtype):
    cout = w_oihw.shape[0]
    patches, (n, ho, wo) = _im2col_nhwc(x_nhwc.astype(jnp.bfloat16), 3, stride, 1)
    m_true, k = patches.shape

    kp = _round_up(k, 128) if k >= 256 else _round_up(k, 16)
    cp = _round_up(cout, 128)
    tm = _pick_tile_m(m_true)
    m_pad = _round_up(m_true, tm)
    n_tiles = m_pad // tm

    patches = jnp.pad(patches, ((0, m_pad - m_true), (0, kp - k)))
    w_mat = jnp.transpose(w_oihw, (2, 3, 1, 0)).reshape(k, cout)
    w_mat = jnp.pad(w_mat, ((0, kp - k), (0, cp - cout))).astype(jnp.bfloat16)

    y, stats = pl.pallas_call(
        _gemm_stats_kernel,
        out_shape=(jax.ShapeDtypeStruct((m_pad, cp), jnp.bfloat16),
                   jax.ShapeDtypeStruct((n_tiles, 2, cp), jnp.float32)),
        grid_spec=pltpu.PrefetchScalarGridSpec(
            num_scalar_prefetch=0,
            grid=(n_tiles,),
            in_specs=[pl.BlockSpec((tm, kp), lambda i: (i, 0)),
                      pl.BlockSpec((kp, cp), lambda i: (0, 0),
                                   pipeline_mode=pl.Buffered(1))],
            out_specs=[pl.BlockSpec((tm, cp), lambda i: (i, 0)),
                       pl.BlockSpec((1, 2, cp), lambda i: (i, 0, 0))]),
        compiler_params=_compiler_params(1),
    )(patches, w_mat)

    out = _bn_relu(y, stats, gamma, beta, cout=cout, m_true=m_true,
                   eps=eps, out_dtype=out_dtype)
    return out[:m_true].reshape(n, ho, wo, cp)[..., :cout]


def dirac_conv_bn_relu(x_nhwc, w_oihw, gamma, beta, *, stride=1, eps=1e-5,
                       out_dtype=jnp.float32):
    if stride == 1:
        return _conv3x3_s1_bn_relu(x_nhwc, w_oihw, gamma, beta,
                                   eps=eps, out_dtype=out_dtype)
    return _conv_bn_relu_im2col(x_nhwc, w_oihw, gamma, beta, stride=stride,
                                eps=eps, out_dtype=out_dtype)


# -----------------------------------------------------------------------------
# Plain-JAX glue: Dirac weight transform + im2col (fallback only)
# -----------------------------------------------------------------------------
def dirac_delta(out_c, in_c, k=3):
    d = jnp.zeros((out_c, in_c, k, k), jnp.float32)
    m = min(out_c, in_c)
    return d.at[jnp.arange(m), jnp.arange(m), k // 2, k // 2].set(1.0)


def normalize_weight(w):
    # F.normalize(w.view(O, -1)).view_as(w): L2 normalize each output filter.
    flat = w.reshape(w.shape[0], -1)
    norm = jnp.sqrt(jnp.sum(flat * flat, axis=1, keepdims=True))
    flat = flat / jnp.maximum(norm, 1e-12)
    return flat.reshape(w.shape)


def transform_weight(weight, alpha, beta, delta):
    v = (-1,) + (1,) * (weight.ndim - 1)
    return alpha.reshape(v) * delta + beta.reshape(v) * normalize_weight(weight)


def _im2col_nhwc(x_nhwc, ksize=3, stride=1, padding=1):
    n, h, w, c = x_nhwc.shape
    xp = jnp.pad(x_nhwc, ((0, 0), (padding, padding), (padding, padding), (0, 0)))
    h_out = (h + 2 * padding - ksize) // stride + 1
    w_out = (w + 2 * padding - ksize) // stride + 1
    taps = []
    for kh in range(ksize):
        for kw in range(ksize):
            taps.append(
                xp[:, kh:kh + stride * h_out:stride, kw:kw + stride * w_out:stride, :]
            )
    patches = jnp.stack(taps, axis=3)  # (N, Ho, Wo, KH*KW, C)
    return patches.reshape(n * h_out * w_out, ksize * ksize * c), (n, h_out, w_out)


# -----------------------------------------------------------------------------
# DiracBasicBlock forward
# -----------------------------------------------------------------------------
def dirac_basic_block(x_nchw, params, stride=1):
    x_nhwc = jnp.transpose(x_nchw, (0, 2, 3, 1))

    # conv1 -> bn1 -> relu (stage-1 output kept in bf16: it feeds the bf16 GEMM
    # of stage 2, halving the intermediate HBM traffic).
    w1 = transform_weight(params["w1"], params["alpha1"], params["beta1"], params["delta1"])
    out1 = dirac_conv_bn_relu(x_nhwc, w1, params["bn1_gamma"], params["bn1_beta"],
                              stride=stride, out_dtype=jnp.bfloat16)

    # conv2 -> bn2 -> relu (stride 1), final output in f32.
    w2 = transform_weight(params["w2"], params["alpha2"], params["beta2"], params["delta2"])
    out2 = dirac_conv_bn_relu(out1, w2, params["bn2_gamma"], params["bn2_beta"],
                              stride=1, out_dtype=jnp.float32)

    return jnp.transpose(out2, (0, 3, 1, 2))  # back to NCHW


# -----------------------------------------------------------------------------
# Pure-JAX reference (bf16 conv inputs / f32 accumulation) for correctness only.
# -----------------------------------------------------------------------------
def _ref_block(x_nchw, params, stride=1, eps=1e-5):
    def conv(x, w, s):
        return lax.conv_general_dilated(
            x.astype(jnp.bfloat16), w.astype(jnp.bfloat16), (s, s), ((1, 1), (1, 1)),
            dimension_numbers=("NCHW", "OIHW", "NCHW"),
            preferred_element_type=jnp.float32)

    def bn_relu(x, g, b):
        mean = jnp.mean(x, axis=(0, 2, 3), keepdims=True)
        var = jnp.mean((x - mean) ** 2, axis=(0, 2, 3), keepdims=True)
        y = (x - mean) * lax.rsqrt(var + eps) * g.reshape(1, -1, 1, 1) + b.reshape(1, -1, 1, 1)
        return jnp.maximum(y, 0.0)

    w1 = transform_weight(params["w1"], params["alpha1"], params["beta1"], params["delta1"])
    w2 = transform_weight(params["w2"], params["alpha2"], params["beta2"], params["delta2"])
    out = bn_relu(conv(x_nchw, w1, stride), params["bn1_gamma"], params["bn1_beta"])
    out = bn_relu(conv(out, w2, 1), params["bn2_gamma"], params["bn2_beta"])
    return out


# -----------------------------------------------------------------------------
if __name__ == "__main__":
    key = jax.random.PRNGKey(0)
    k1, k2, kx = jax.random.split(key, 3)

    N, Cin, Cout, H, W = 2, 4, 8, 16, 16

    params = {
        # DiracConv2d 1: in=Cin, out=Cout, k=3
        "w1": 0.1 * jax.random.normal(k1, (Cout, Cin, 3, 3), jnp.float32),
        "alpha1": jnp.ones((Cout,), jnp.float32),
        "beta1": jnp.full((Cout,), 0.1, jnp.float32),
        "delta1": dirac_delta(Cout, Cin, 3),
        "bn1_gamma": jnp.ones((Cout,), jnp.float32),
        "bn1_beta": jnp.zeros((Cout,), jnp.float32),
        # DiracConv2d 2: in=Cout, out=Cout, k=3
        "w2": 0.1 * jax.random.normal(k2, (Cout, Cout, 3, 3), jnp.float32),
        "alpha2": jnp.ones((Cout,), jnp.float32),
        "beta2": jnp.full((Cout,), 0.1, jnp.float32),
        "delta2": dirac_delta(Cout, Cout, 3),
        "bn2_gamma": jnp.ones((Cout,), jnp.float32),
        "bn2_beta": jnp.zeros((Cout,), jnp.float32),
    }

    x = jax.random.normal(kx, (N, Cin, H, W), jnp.float32)

    fwd = jax.jit(dirac_basic_block, static_argnames=("stride",))

    # stride=1: both conv stages use the fused halo'd-row 9-tap GEMM path.
    out = jax.block_until_ready(fwd(x, params, stride=1))
    ref = jax.block_until_ready(_ref_block(x, params, stride=1))
    assert out.shape == (N, Cout, H, W), out.shape
    # Tolerance accounts for bf16 MXU inputs, bf16 conv intermediate y, and the
    # bf16 stage-1 activation (f32 accumulation / f32 BN stats throughout).
    assert jnp.allclose(out, ref, rtol=3e-2, atol=3e-2), float(jnp.max(jnp.abs(out - ref)))

    # stride=2: conv1 exercises the im2col-GEMM fallback, conv2 the fused path.
    out2 = jax.block_until_ready(fwd(x, params, stride=2))
    ref2 = jax.block_until_ready(_ref_block(x, params, stride=2))
    assert out2.shape == (N, Cout, H // 2, W // 2), out2.shape
    assert jnp.allclose(out2, ref2, rtol=3e-2, atol=3e-2), float(jnp.max(jnp.abs(out2 - ref2)))

    print("KERNEL_OK")
</pallas_src>

<mosaic_0001>
module attributes {stable_mosaic.version = 11 : i64} {
  func.func @_bn_relu_kernel(%arg0: i32, %arg1: memref<128x128xbf16, #tpu.memory_space<vmem>>, %arg2: memref<4x128xf32, #tpu.memory_space<vmem>>, %arg3: memref<128x128xbf16, #tpu.memory_space<vmem>>) attributes {dimension_semantics = [#tpu.dimension_semantics<parallel>], iteration_bounds = array<i64: 4>, scalar_prefetch = 0 : i64, scratch_operands = 0 : i64, tpu.core_type = #tpu.core_type<tc>, window_params = [{transform_indices = @transform_0, window_bounds = array<i64: 128, 128>}, {pipeline_mode = #tpu.pipeline_mode<synchronous>, transform_indices = @transform_1, window_bounds = array<i64: 4, 128>}, {transform_indices = @transform_2, window_bounds = array<i64: 128, 128>}]} {
    %c0 = arith.constant 0 : index
    %c0_0 = arith.constant 0 : index
    %0 = vector.load %arg2[%c0, %c0_0] : memref<4x128xf32, #tpu.memory_space<vmem>>, vector<4x128xf32>
    %1 = vector.extract_strided_slice %0 {offsets = [0, 0], sizes = [1, 128], strides = [1, 1]} : vector<4x128xf32> to vector<1x128xf32>
    %cst = arith.constant 0.001953125 : f32
    %2 = vector.broadcast %cst : f32 to vector<1x128xf32>
    %3 = arith.mulf %1, %2 : vector<1x128xf32>
    %4 = vector.extract_strided_slice %0 {offsets = [1, 0], sizes = [1, 128], strides = [1, 1]} : vector<4x128xf32> to vector<1x128xf32>
    %cst_1 = arith.constant 0.001953125 : f32
    %5 = vector.broadcast %cst_1 : f32 to vector<1x128xf32>
    %6 = arith.mulf %4, %5 : vector<1x128xf32>
    %7 = arith.mulf %3, %3 : vector<1x128xf32>
    %8 = arith.subf %6, %7 : vector<1x128xf32>
    %cst_2 = arith.constant 0.000000e+00 : f32
    %9 = vector.broadcast %cst_2 : f32 to vector<1x128xf32>
    %10 = arith.maximumf %8, %9 : vector<1x128xf32>
    %11 = vector.extract_strided_slice %0 {offsets = [2, 0], sizes = [1, 128], strides = [1, 1]} : vector<4x128xf32> to vector<1x128xf32>
    %cst_3 = arith.constant 9.99999974E-6 : f32
    %12 = vector.broadcast %cst_3 : f32 to vector<1x128xf32>
    %13 = arith.addf %10, %12 : vector<1x128xf32>
    %14 = math.rsqrt %13 : vector<1x128xf32>
    %15 = arith.mulf %11, %14 : vector<1x128xf32>
    %16 = vector.extract_strided_slice %0 {offsets = [3, 0], sizes = [1, 128], strides = [1, 1]} : vector<4x128xf32> to vector<1x128xf32>
    %17 = arith.mulf %3, %15 : vector<1x128xf32>
    %18 = arith.subf %16, %17 : vector<1x128xf32>
    %c0_4 = arith.constant 0 : index
    %c0_5 = arith.constant 0 : index
    %19 = vector.load %arg1[%c0_4, %c0_5] : memref<128x128xbf16, #tpu.memory_space<vmem>>, vector<128x128xbf16>
    %20 = arith.extf %19 : vector<128x128xbf16> to vector<128x128xf32>
    %21 = vector.broadcast %15 : vector<1x128xf32> to vector<128x128xf32>
    %22 = arith.mulf %20, %21 : vector<128x128xf32>
    %23 = vector.broadcast %18 : vector<1x128xf32> to vector<128x128xf32>
    %24 = arith.addf %22, %23 : vector<128x128xf32>
    %cst_6 = arith.constant 0.000000e+00 : f32
    %25 = vector.broadcast %cst_6 : f32 to vector<128x128xf32>
    %26 = arith.maximumf %24, %25 : vector<128x128xf32>
    %27 = arith.truncf %26 : vector<128x128xf32> to vector<128x128xbf16>
    %c0_7 = arith.constant 0 : index
    %c0_8 = arith.constant 0 : index
    %28 = vector.load %arg3[%c0_7, %c0_8] : memref<128x128xbf16, #tpu.memory_space<vmem>>, vector<128x128xbf16>
    tpu.vector_store %arg3[%c0_7, %c0_8], %27 {strides = array<i32>} : memref<128x128xbf16, #tpu.memory_space<vmem>>, vector<128x128xbf16>,
    return
  }
  func.func @transform_0(%arg0: i32) -> (i32, i32) {
    %c0_i32 = arith.constant 0 : i32
    %c0_i32_0 = arith.constant 0 : i32
    return %arg0, %c0_i32 : i32, i32
  }
  func.func @transform_1(%arg0: i32) -> (i32, i32) {
    %c0_i32 = arith.constant 0 : i32
    %c0_i32_0 = arith.constant 0 : i32
    %c0_i32_1 = arith.constant 0 : i32
    return %c0_i32, %c0_i32_0 : i32, i32
  }
  func.func @transform_2(%arg0: i32) -> (i32, i32) {
    %c0_i32 = arith.constant 0 : i32
    %c0_i32_0 = arith.constant 0 : i32
    return %arg0, %c0_i32 : i32, i32
  }
}

module attributes {stable_mosaic.version = 11 : i64} {
  func.func @_conv3x3_s1_kernel(%arg0: i32, %arg1: i32, %arg2: memref<1x8x24x8xbf16, #tpu.memory_space<vmem>>, %arg3: memref<1x1x24x8xbf16, #tpu.memory_space<vmem>>, %arg4: memref<1x1x24x8xbf16, #tpu.memory_space<vmem>>, %arg5: memref<9x8x128xbf16, #tpu.memory_space<vmem>>, %arg6: memref<1x1x128x128xbf16, #tpu.memory_space<vmem>>, %arg7: memref<1x1x2x128xf32, #tpu.memory_space<vmem>>, %arg8: memref<10x24x8xbf16, #tpu.memory_space<vmem>>, %arg9: memref<128x128xf32, #tpu.memory_space<vmem>>) attributes {dimension_semantics = [#tpu.dimension_semantics<parallel>, #tpu.dimension_semantics<parallel>], iteration_bounds = array<i64: 2, 2>, scalar_prefetch = 0 : i64, scratch_operands = 2 : i64, tpu.core_type = #tpu.core_type<tc>, window_params = [{transform_indices = @transform_0, window_bounds = array<i64: 1, 8, 24, 8>}, {transform_indices = @transform_1, window_bounds = array<i64: 1, 1, 24, 8>}, {transform_indices = @transform_2, window_bounds = array<i64: 1, 1, 24, 8>}, {pipeline_mode = #tpu.pipeline_mode<synchronous>, transform_indices = @transform_3, window_bounds = array<i64: 9, 8, 128>}, {transform_indices = @transform_4, window_bounds = array<i64: 1, 1, 128, 128>}, {transform_indices = @transform_5, window_bounds = array<i64: 1, 1, 2, 128>}]} {
    %c0 = arith.constant 0 : index
    %c0_0 = arith.constant 0 : index
    %c0_1 = arith.constant 0 : index
    %c0_2 = arith.constant 0 : index
    %0 = vector.load %arg2[%c0, %c0_0, %c0_1, %c0_2] : memref<1x8x24x8xbf16, #tpu.memory_space<vmem>>, vector<1x8x24x8xbf16>
    %1 = vector.shape_cast %0 : vector<1x8x24x8xbf16> to vector<8x24x8xbf16>
    %c0_3 = arith.constant 0 : index
    %c0_4 = arith.constant 0 : index
    %c0_5 = arith.constant 0 : index
    %2 = vector.load %arg8[%c0_3, %c0_4, %c0_5] : memref<10x24x8xbf16, #tpu.memory_space<vmem>>, vector<8x24x8xbf16>
    tpu.vector_store %arg8[%c0_3, %c0_4, %c0_5], %1 {strides = array<i32>} : memref<10x24x8xbf16, #tpu.memory_space<vmem>>, vector<8x24x8xbf16>,
    %c0_6 = arith.constant 0 : index
    %c0_7 = arith.constant 0 : index
    %c0_8 = arith.constant 0 : index
    %c0_9 = arith.constant 0 : index
    %3 = vector.load %arg3[%c0_6, %c0_7, %c0_8, %c0_9] : memref<1x1x24x8xbf16, #tpu.memory_space<vmem>>, vector<1x1x24x8xbf16>
    %4 = vector.shape_cast %3 : vector<1x1x24x8xbf16> to vector<24x8xbf16>
    %c8 = arith.constant 8 : index
    %c0_10 = arith.constant 0 : index
    %c0_11 = arith.constant 0 : index
    %5 = vector.load %arg8[%c8, %c0_10, %c0_11] : memref<10x24x8xbf16, #tpu.memory_space<vmem>>, vector<1x24x8xbf16>
    %6 = vector.shape_cast %5 : vector<1x24x8xbf16> to vector<24x8xbf16>
    %7 = vector.shape_cast %4 : vector<24x8xbf16> to vector<1x24x8xbf16>
    tpu.vector_store %arg8[%c8, %c0_10, %c0_11], %7 {strides = array<i32>} : memref<10x24x8xbf16, #tpu.memory_space<vmem>>, vector<1x24x8xbf16>,
    %c0_12 = arith.constant 0 : index
    %c0_13 = arith.constant 0 : index
    %c0_14 = arith.constant 0 : index
    %c0_15 = arith.constant 0 : index
    %8 = vector.load %arg4[%c0_12, %c0_13, %c0_14, %c0_15] : memref<1x1x24x8xbf16, #tpu.memory_space<vmem>>, vector<1x1x24x8xbf16>
    %9 = vector.shape_cast %8 : vector<1x1x24x8xbf16> to vector<24x8xbf16>
    %c9 = arith.constant 9 : index
    %c0_16 = arith.constant 0 : index
    %c0_17 = arith.constant 0 : index
    %10 = vector.load %arg8[%c9, %c0_16, %c0_17] : memref<10x24x8xbf16, #tpu.memory_space<vmem>>, vector<1x24x8xbf16>
    %11 = vector.shape_cast %10 : vector<1x24x8xbf16> to vector<24x8xbf16>
    %12 = vector.shape_cast %9 : vector<24x8xbf16> to vector<1x24x8xbf16>
    tpu.vector_store %arg8[%c9, %c0_16, %c0_17], %12 {strides = array<i32>} : memref<10x24x8xbf16, #tpu.memory_space<vmem>>, vector<1x24x8xbf16>,
    %c0_18 = arith.constant 0 : index
    %c0_19 = arith.constant 0 : index
    %c0_20 = arith.constant 0 : index
    %13 = vector.load %arg8[%c0_18, %c0_19, %c0_20] : memref<10x24x8xbf16, #tpu.memory_space<vmem>>, vector<8x16x8xbf16>
    %14 = vector.shape_cast %13 : vector<8x16x8xbf16> to vector<128x8xbf16>
    %c0_21 = arith.constant 0 : index
    %c0_22 = arith.constant 0 : index
    %c0_23 = arith.constant 0 : index
    %15 = vector.load %arg5[%c0_21, %c0_22, %c0_23] : memref<9x8x128xbf16, #tpu.memory_space<vmem>>, vector<1x8x128xbf16>
    %16 = vector.shape_cast %15 : vector<1x8x128xbf16> to vector<8x128xbf16>
    %cst = arith.constant dense<0.000000e+00> : vector<128x128xf32>
    %17 = tpu.matmul %14, %16, %cst {dimension_numbers = #tpu.dot_dimension_numbers<[1], [0], [0], [1], [0, 0, 1, 1], [], []>} : vector<128x8xbf16>, vector<8x128xbf16>, vector<128x128xf32> -> vector<128x128xf32>
    %c0_24 = arith.constant 0 : index
    %c0_25 = arith.constant 0 : index
    %18 = vector.load %arg9[%c0_24, %c0_25] : memref<128x128xf32, #tpu.memory_space<vmem>>, vector<128x128xf32>
    tpu.vector_store %arg9[%c0_24, %c0_25], %17 {strides = array<i32>} : memref<128x128xf32, #tpu.memory_space<vmem>>, vector<128x128xf32>,
    %c0_26 = arith.constant 0 : index
    %c1 = arith.constant 1 : index
    %c0_27 = arith.constant 0 : index
    %19 = vector.load %arg8[%c0_26, %c1, %c0_27] : memref<10x24x8xbf16, #tpu.memory_space<vmem>>, vector<8x16x8xbf16>
    %20 = vector.shape_cast %19 : vector<8x16x8xbf16> to vector<128x8xbf16>
    %c1_28 = arith.constant 1 : index
    %c0_29 = arith.constant 0 : index
    %c0_30 = arith.constant 0 : index
    %21 = vector.load %arg5[%c1_28, %c0_29, %c0_30] : memref<9x8x128xbf16, #tpu.memory_space<vmem>>, vector<1x8x128xbf16>
    %22 = vector.shape_cast %21 : vector<1x8x128xbf16> to vector<8x128xbf16>
    %cst_31 = arith.constant dense<0.000000e+00> : vector<128x128xf32>
    %23 = tpu.matmul %20, %22, %cst_31 {dimension_numbers = #tpu.dot_dimension_numbers<[1], [0], [0], [1], [0, 0, 1, 1], [], []>} : vector<128x8xbf16>, vector<8x128xbf16>, vector<128x128xf32> -> vector<128x128xf32>
    %c0_32 = arith.constant 0 : index
    %c0_33 = arith.constant 0 : index
    %24 = vector.load %arg9[%c0_32, %c0_33] : memref<128x128xf32, #tpu.memory_space<vmem>>, vector<128x128xf32>
    %25 = arith.addf %24, %23 : vector<128x128xf32>
    %c0_34 = arith.constant 0 : index
    %c0_35 = arith.constant 0 : index
    %26 = vector.load %arg9[%c0_34, %c0_35] : memref<128x128xf32, #tpu.memory_space<vmem>>, vector<128x128xf32>
    tpu.vector_store %arg9[%c0_34, %c0_35], %25 {strides = array<i32>} : memref<128x128xf32, #tpu.memory_space<vmem>>, vector<128x128xf32>,
    %c0_36 = arith.constant 0 : index
    %c2 = arith.constant 2 : index
    %c0_37 = arith.constant 0 : index
    %27 = vector.load %arg8[%c0_36, %c2, %c0_37] : memref<10x24x8xbf16, #tpu.memory_space<vmem>>, vector<8x16x8xbf16>
    %28 = vector.shape_cast %27 : vector<8x16x8xbf16> to vector<128x8xbf16>
    %c2_38 = arith.constant 2 : index
    %c0_39 = arith.constant 0 : index
    %c0_40 = arith.constant 0 : index
    %29 = vector.load %arg5[%c2_38, %c0_39, %c0_40] : memref<9x8x128xbf16, #tpu.memory_space<vmem>>, vector<1x8x128xbf16>
    %30 = vector.shape_cast %29 : vector<1x8x128xbf16> to vector<8x128xbf16>
    %cst_41 = arith.constant dense<0.000000e+00> : vector<128x128xf32>
    %31 = tpu.matmul %28, %30, %cst_41 {dimension_numbers = #tpu.dot_dimension_numbers<[1], [0], [0], [1], [0, 0, 1, 1], [], []>} : vector<128x8xbf16>, vector<8x128xbf16>, vector<128x128xf32> -> vector<128x128xf32>
    %c0_42 = arith.constant 0 : index
    %c0_43 = arith.constant 0 : index
    %32 = vector.load %arg9[%c0_42, %c0_43] : memref<128x128xf32, #tpu.memory_space<vmem>>, vector<128x128xf32>
    %33 = arith.addf %32, %31 : vector<128x128xf32>
    %c0_44 = arith.constant 0 : index
    %c0_45 = arith.constant 0 : index
    %34 = vector.load %arg9[%c0_44, %c0_45] : memref<128x128xf32, #tpu.memory_space<vmem>>, vector<128x128xf32>
    tpu.vector_store %arg9[%c0_44, %c0_45], %33 {strides = array<i32>} : memref<128x128xf32, #tpu.memory_space<vmem>>, vector<128x128xf32>,
    %c1_46 = arith.constant 1 : index
    %c0_47 = arith.constant 0 : index
    %c0_48 = arith.constant 0 : index
    %35 = vector.load %arg8[%c1_46, %c0_47, %c0_48] : memref<10x24x8xbf16, #tpu.memory_space<vmem>>, vector<8x16x8xbf16>
    %36 = vector.shape_cast %35 : vector<8x16x8xbf16> to vector<128x8xbf16>
    %c3 = arith.constant 3 : index
    %c0_49 = arith.constant 0 : index
    %c0_50 = arith.constant 0 : index
    %37 = vector.load %arg5[%c3, %c0_49, %c0_50] : memref<9x8x128xbf16, #tpu.memory_space<vmem>>, vector<1x8x128xbf16>
    %38 = vector.shape_cast %37 : vector<1x8x128xbf16> to vector<8x128xbf16>
    %cst_51 = arith.constant dense<0.000000e+00> : vector<128x128xf32>
    %39 = tpu.matmul %36, %38, %cst_51 {dimension_numbers = #tpu.dot_dimension_numbers<[1], [0], [0], [1], [0, 0, 1, 1], [], []>} : vector<128x8xbf16>, vector<8x128xbf16>, vector<128x128xf32> -> vector<128x128xf32>
    %c0_52 = arith.constant 0 : index
    %c0_53 = arith.constant 0 : index
    %40 = vector.load %arg9[%c0_52, %c0_53] : memref<128x128xf32, #tpu.memory_space<vmem>>, vector<128x128xf32>
    %41 = arith.addf %40, %39 : vector<128x128xf32>
    %c0_54 = arith.constant 0 : index
    %c0_55 = arith.constant 0 : index
    %42 = vector.load %arg9[%c0_54, %c0_55] : memref<128x128xf32, #tpu.memory_space<vmem>>, vector<128x128xf32>
    tpu.vector_store %arg9[%c0_54, %c0_55], %41 {strides = array<i32>} : memref<128x128xf32, #tpu.memory_space<vmem>>, vector<128x128xf32>,
    %c1_56 = arith.constant 1 : index
    %c1_57 = arith.constant 1 : index
    %c0_58 = arith.constant 0 : index
    %43 = vector.load %arg8[%c1_56, %c1_57, %c0_58] : memref<10x24x8xbf16, #tpu.memory_space<vmem>>, vector<8x16x8xbf16>
    %44 = vector.shape_cast %43 : vector<8x16x8xbf16> to vector<128x8xbf16>
    %c4 = arith.constant 4 : index
    %c0_59 = arith.constant 0 : index
    %c0_60 = arith.constant 0 : index
    %45 = vector.load %arg5[%c4, %c0_59, %c0_60] : memref<9x8x128xbf16, #tpu.memory_space<vmem>>, vector<1x8x128xbf16>
    %46 = vector.shape_cast %45 : vector<1x8x128xbf16> to vector<8x128xbf16>
    %cst_61 = arith.constant dense<0.000000e+00> : vector<128x128xf32>
    %47 = tpu.matmul %44, %46, %cst_61 {dimension_numbers = #tpu.dot_dimension_numbers<[1], [0], [0], [1], [0, 0, 1, 1], [], []>} : vector<128x8xbf16>, vector<8x128xbf16>, vector<128x128xf32> -> vector<128x128xf32>
    %c0_62 = arith.constant 0 : index
    %c0_63 = arith.constant 0 : index
    %48 = vector.load %arg9[%c0_62, %c0_63] : memref<128x128xf32, #tpu.memory_space<vmem>>, vector<128x128xf32>
    %49 = arith.addf %48, %47 : vector<128x128xf32>
    %c0_64 = arith.constant 0 : index
    %c0_65 = arith.constant 0 : index
    %50 = vector.load %arg9[%c0_64, %c0_65] : memref<128x128xf32, #tpu.memory_space<vmem>>, vector<128x128xf32>
    tpu.vector_store %arg9[%c0_64, %c0_65], %49 {strides = array<i32>} : memref<128x128xf32, #tpu.memory_space<vmem>>, vector<128x128xf32>,
    %c1_66 = arith.constant 1 : index
    %c2_67 = arith.constant 2 : index
    %c0_68 = arith.constant 0 : index
    %51 = vector.load %arg8[%c1_66, %c2_67, %c0_68] : memref<10x24x8xbf16, #tpu.memory_space<vmem>>, vector<8x16x8xbf16>
    %52 = vector.shape_cast %51 : vector<8x16x8xbf16> to vector<128x8xbf16>
    %c5 = arith.constant 5 : index
    %c0_69 = arith.constant 0 : index
    %c0_70 = arith.constant 0 : index
    %53 = vector.load %arg5[%c5, %c0_69, %c0_70] : memref<9x8x128xbf16, #tpu.memory_space<vmem>>, vector<1x8x128xbf16>
    %54 = vector.shape_cast %53 : vector<1x8x128xbf16> to vector<8x128xbf16>
    %cst_71 = arith.constant dense<0.000000e+00> : vector<128x128xf32>
    %55 = tpu.matmul %52, %54, %cst_71 {dimension_numbers = #tpu.dot_dimension_numbers<[1], [0], [0], [1], [0, 0, 1, 1], [], []>} : vector<128x8xbf16>, vector<8x128xbf16>, vector<128x128xf32> -> vector<128x128xf32>
    %c0_72 = arith.constant 0 : index
    %c0_73 = arith.constant 0 : index
    %56 = vector.load %arg9[%c0_72, %c0_73] : memref<128x128xf32, #tpu.memory_space<vmem>>, vector<128x128xf32>
    %57 = arith.addf %56, %55 : vector<128x128xf32>
    %c0_74 = arith.constant 0 : index
    %c0_75 = arith.constant 0 : index
    %58 = vector.load %arg9[%c0_74, %c0_75] : memref<128x128xf32, #tpu.memory_space<vmem>>, vector<128x128xf32>
    tpu.vector_store %arg9[%c0_74, %c0_75], %57 {strides = array<i32>} : memref<128x128xf32, #tpu.memory_space<vmem>>, vector<128x128xf32>,
    %c2_76 = arith.constant 2 : index
    %c0_77 = arith.constant 0 : index
    %c0_78 = arith.constant 0 : index
    %59 = vector.load %arg8[%c2_76, %c0_77, %c0_78] : memref<10x24x8xbf16, #tpu.memory_space<vmem>>, vector<8x16x8xbf16>
    %60 = vector.shape_cast %59 : vector<8x16x8xbf16> to vector<128x8xbf16>
    %c6 = arith.constant 6 : index
    %c0_79 = arith.constant 0 : index
    %c0_80 = arith.constant 0 : index
    %61 = vector.load %arg5[%c6, %c0_79, %c0_80] : memref<9x8x128xbf16, #tpu.memory_space<vmem>>, vector<1x8x128xbf16>
    %62 = vector.shape_cast %61 : vector<1x8x128xbf16> to vector<8x128xbf16>
    %cst_81 = arith.constant dense<0.000000e+00> : vector<128x128xf32>
    %63 = tpu.matmul %60, %62, %cst_81 {dimension_numbers = #tpu.dot_dimension_numbers<[1], [0], [0], [1], [0, 0, 1, 1], [], []>} : vector<128x8xbf16>, vector<8x128xbf16>, vector<128x128xf32> -> vector<128x128xf32>
    %c0_82 = arith.constant 0 : index
    %c0_83 = arith.constant 0 : index
    %64 = vector.load %arg9[%c0_82, %c0_83] : memref<128x128xf32, #tpu.memory_space<vmem>>, vector<128x128xf32>
    %65 = arith.addf %64, %63 : vector<128x128xf32>
    %c0_84 = arith.constant 0 : index
    %c0_85 = arith.constant 0 : index
    %66 = vector.load %arg9[%c0_84, %c0_85] : memref<128x128xf32, #tpu.memory_space<vmem>>, vector<128x128xf32>
    tpu.vector_store %arg9[%c0_84, %c0_85], %65 {strides = array<i32>} : memref<128x128xf32, #tpu.memory_space<vmem>>, vector<128x128xf32>,
    %c2_86 = arith.constant 2 : index
    %c1_87 = arith.constant 1 : index
    %c0_88 = arith.constant 0 : index
    %67 = vector.load %arg8[%c2_86, %c1_87, %c0_88] : memref<10x24x8xbf16, #tpu.memory_space<vmem>>, vector<8x16x8xbf16>
    %68 = vector.shape_cast %67 : vector<8x16x8xbf16> to vector<128x8xbf16>
    %c7 = arith.constant 7 : index
    %c0_89 = arith.constant 0 : index
    %c0_90 = arith.constant 0 : index
    %69 = vector.load %arg5[%c7, %c0_89, %c0_90] : memref<9x8x128xbf16, #tpu.memory_space<vmem>>, vector<1x8x128xbf16>
    %70 = vector.shape_cast %69 : vector<1x8x128xbf16> to vector<8x128xbf16>
    %cst_91 = arith.constant dense<0.000000e+00> : vector<128x128xf32>
    %71 = tpu.matmul %68, %70, %cst_91 {dimension_numbers = #tpu.dot_dimension_numbers<[1], [0], [0], [1], [0, 0, 1, 1], [], []>} : vector<128x8xbf16>, vector<8x128xbf16>, vector<128x128xf32> -> vector<128x128xf32>
    %c0_92 = arith.constant 0 : index
    %c0_93 = arith.constant 0 : index
    %72 = vector.load %arg9[%c0_92, %c0_93] : memref<128x128xf32, #tpu.memory_space<vmem>>, vector<128x128xf32>
    %73 = arith.addf %72, %71 : vector<128x128xf32>
    %c0_94 = arith.constant 0 : index
    %c0_95 = arith.constant 0 : index
    %74 = vector.load %arg9[%c0_94, %c0_95] : memref<128x128xf32, #tpu.memory_space<vmem>>, vector<128x128xf32>
    tpu.vector_store %arg9[%c0_94, %c0_95], %73 {strides = array<i32>} : memref<128x128xf32, #tpu.memory_space<vmem>>, vector<128x128xf32>,
    %c2_96 = arith.constant 2 : index
    %c2_97 = arith.constant 2 : index
    %c0_98 = arith.constant 0 : index
    %75 = vector.load %arg8[%c2_96, %c2_97, %c0_98] : memref<10x24x8xbf16, #tpu.memory_space<vmem>>, vector<8x16x8xbf16>
    %76 = vector.shape_cast %75 : vector<8x16x8xbf16> to vector<128x8xbf16>
    %c8_99 = arith.constant 8 : index
    %c0_100 = arith.constant 0 : index
    %c0_101 = arith.constant 0 : index
    %77 = vector.load %arg5[%c8_99, %c0_100, %c0_101] : memref<9x8x128xbf16, #tpu.memory_space<vmem>>, vector<1x8x128xbf16>
    %78 = vector.shape_cast %77 : vector<1x8x128xbf16> to vector<8x128xbf16>
    %cst_102 = arith.constant dense<0.000000e+00> : vector<128x128xf32>
    %79 = tpu.matmul %76, %78, %cst_102 {dimension_numbers = #tpu.dot_dimension_numbers<[1], [0], [0], [1], [0, 0, 1, 1], [], []>} : vector<128x8xbf16>, vector<8x128xbf16>, vector<128x128xf32> -> vector<128x128xf32>
    %c0_103 = arith.constant 0 : index
    %c0_104 = arith.constant 0 : index
    %80 = vector.load %arg9[%c0_103, %c0_104] : memref<128x128xf32, #tpu.memory_space<vmem>>, vector<128x128xf32>
    %81 = arith.addf %80, %79 : vector<128x128xf32>
    %c0_105 = arith.constant 0 : index
    %c0_106 = arith.constant 0 : index
    %82 = vector.load %arg9[%c0_105, %c0_106] : memref<128x128xf32, #tpu.memory_space<vmem>>, vector<128x128xf32>
    tpu.vector_store %arg9[%c0_105, %c0_106], %81 {strides = array<i32>} : memref<128x128xf32, #tpu.memory_space<vmem>>, vector<128x128xf32>,
    %c0_107 = arith.constant 0 : index
    %c0_108 = arith.constant 0 : index
    %83 = vector.load %arg9[%c0_107, %c0_108] : memref<128x128xf32, #tpu.memory_space<vmem>>, vector<128x128xf32>
    %84 = arith.truncf %83 : vector<128x128xf32> to vector<128x128xbf16>
    %c0_109 = arith.constant 0 : index
    %c0_110 = arith.constant 0 : index
    %c0_111 = arith.constant 0 : index
    %c0_112 = arith.constant 0 : index
    %85 = vector.load %arg6[%c0_109, %c0_110, %c0_111, %c0_112] : memref<1x1x128x128xbf16, #tpu.memory_space<vmem>>, vector<1x1x128x128xbf16>
    %86 = vector.shape_cast %85 : vector<1x1x128x128xbf16> to vector<128x128xbf16>
    %87 = vector.shape_cast %84 : vector<128x128xbf16> to vector<1x1x128x128xbf16>
    tpu.vector_store %arg6[%c0_109, %c0_110, %c0_111, %c0_112], %87 {strides = array<i32>} : memref<1x1x128x128xbf16, #tpu.memory_space<vmem>>, vector<1x1x128x128xbf16>,
    %cst_113 = arith.constant dense<0.000000e+00> : vector<128xf32>
    %88 = vector.multi_reduction <add>, %83, %cst_113 [0] : vector<128x128xf32> to vector<128xf32>
    %89 = vector.shape_cast %88 : vector<128xf32> to vector<1x128xf32>
    %90 = arith.mulf %83, %83 : vector<128x128xf32>
    %cst_114 = arith.constant dense<0.000000e+00> : vector<128xf32>
    %91 = vector.multi_reduction <add>, %90, %cst_114 [0] : vector<128x128xf32> to vector<128xf32>
    %92 = vector.shape_cast %91 : vector<128xf32> to vector<1x128xf32>
    %93 = tpu.concatenate %89, %92 in 0 : vector<1x128xf32>, vector<1x128xf32> -> vector<2x128xf32>
    %c0_115 = arith.constant 0 : index
    %c0_116 = arith.constant 0 : index
    %c0_117 = arith.constant 0 : index
    %c0_118 = arith.constant 0 : index
    %94 = vector.load %arg7[%c0_115, %c0_116, %c0_117, %c0_118] : memref<1x1x2x128xf32, #tpu.memory_space<vmem>>, vector<1x1x2x128xf32>
    %95 = vector.shape_cast %94 : vector<1x1x2x128xf32> to vector<2x128xf32>
    %96 = vector.shape_cast %93 : vector<2x128xf32> to vector<1x1x2x128xf32>
    tpu.vector_store %arg7[%c0_115, %c0_116, %c0_117, %c0_118], %96 {strides = array<i32>} : memref<1x1x2x128xf32, #tpu.memory_space<vmem>>, vector<1x1x2x128xf32>,
    return
  }
  func.func @transform_0(%arg0: i32, %arg1: i32) -> (i32, i32, i32, i32) {
    %c0_i32 = arith.constant 0 : i32
    %c0_i32_0 = arith.constant 0 : i32
    %c0_i32_1 = arith.constant 0 : i32
    return %arg0, %arg1, %c0_i32, %c0_i32_0 : i32, i32, i32, i32
  }
  func.func @transform_1(%arg0: i32, %arg1: i32) -> (i32, i32, i32, i32) {
    %c8_i32 = arith.constant 8 : i32
    %0 = arith.muli %arg1, %c8_i32 : i32
    %c8_i32_0 = arith.constant 8 : i32
    %1 = arith.addi %0, %c8_i32_0 : i32
    %c0_i32 = arith.constant 0 : i32
    %c0_i32_1 = arith.constant 0 : i32
    %c0_i32_2 = arith.constant 0 : i32
    return %arg0, %1, %c0_i32, %c0_i32_1 : i32, i32, i32, i32
  }
  func.func @transform_2(%arg0: i32, %arg1: i32) -> (i32, i32, i32, i32) {
    %c8_i32 = arith.constant 8 : i32
    %0 = arith.muli %arg1, %c8_i32 : i32
    %c8_i32_0 = arith.constant 8 : i32
    %1 = arith.addi %0, %c8_i32_0 : i32
    %c1_i32 = arith.constant 1 : i32
    %2 = arith.addi %1, %c1_i32 : i32
    %c0_i32 = arith.constant 0 : i32
    %c0_i32_1 = arith.constant 0 : i32
    %c0_i32_2 = arith.constant 0 : i32
    return %arg0, %2, %c0_i32, %c0_i32_1 : i32, i32, i32, i32
  }
  func.func @transform_3(%arg0: i32, %arg1: i32) -> (i32, i32, i32) {
    %c0_i32 = arith.constant 0 : i32
    %c0_i32_0 = arith.constant 0 : i32
    %c0_i32_1 = arith.constant 0 : i32
    %c0_i32_2 = arith.constant 0 : i32
    return %c0_i32, %c0_i32_0, %c0_i32_1 : i32, i32, i32
  }
  func.func @transform_4(%arg0: i32, %arg1: i32) -> (i32, i32, i32, i32) {
    %c0_i32 = arith.constant 0 : i32
    %c0_i32_0 = arith.constant 0 : i32
    %c0_i32_1 = arith.constant 0 : i32
    return %arg0, %arg1, %c0_i32, %c0_i32_0 : i32, i32, i32, i32
  }
  func.func @transform_5(%arg0: i32, %arg1: i32) -> (i32, i32, i32, i32) {
    %c0_i32 = arith.constant 0 : i32
    %c0_i32_0 = arith.constant 0 : i32
    %c0_i32_1 = arith.constant 0 : i32
    return %arg0, %arg1, %c0_i32, %c0_i32_0 : i32, i32, i32, i32
  }
}

module attributes {stable_mosaic.version = 11 : i64} {
  func.func @_bn_relu_kernel(%arg0: i32, %arg1: memref<128x128xbf16, #tpu.memory_space<vmem>>, %arg2: memref<4x128xf32, #tpu.memory_space<vmem>>, %arg3: memref<128x128xf32, #tpu.memory_space<vmem>>) attributes {dimension_semantics = [#tpu.dimension_semantics<parallel>], iteration_bounds = array<i64: 4>, scalar_prefetch = 0 : i64, scratch_operands = 0 : i64, tpu.core_type = #tpu.core_type<tc>, window_params = [{transform_indices = @transform_0, window_bounds = array<i64: 128, 128>}, {pipeline_mode = #tpu.pipeline_mode<synchronous>, transform_indices = @transform_1, window_bounds = array<i64: 4, 128>}, {transform_indices = @transform_2, window_bounds = array<i64: 128, 128>}]} {
    %c0 = arith.constant 0 : index
    %c0_0 = arith.constant 0 : index
    %0 = vector.load %arg2[%c0, %c0_0] : memref<4x128xf32, #tpu.memory_space<vmem>>, vector<4x128xf32>
    %1 = vector.extract_strided_slice %0 {offsets = [0, 0], sizes = [1, 128], strides = [1, 1]} : vector<4x128xf32> to vector<1x128xf32>
    %cst = arith.constant 0.001953125 : f32
    %2 = vector.broadcast %cst : f32 to vector<1x128xf32>
    %3 = arith.mulf %1, %2 : vector<1x128xf32>
    %4 = vector.extract_strided_slice %0 {offsets = [1, 0], sizes = [1, 128], strides = [1, 1]} : vector<4x128xf32> to vector<1x128xf32>
    %cst_1 = arith.constant 0.001953125 : f32
    %5 = vector.broadcast %cst_1 : f32 to vector<1x128xf32>
    %6 = arith.mulf %4, %5 : vector<1x128xf32>
    %7 = arith.mulf %3, %3 : vector<1x128xf32>
    %8 = arith.subf %6, %7 : vector<1x128xf32>
    %cst_2 = arith.constant 0.000000e+00 : f32
    %9 = vector.broadcast %cst_2 : f32 to vector<1x128xf32>
    %10 = arith.maximumf %8, %9 : vector<1x128xf32>
    %11 = vector.extract_strided_slice %0 {offsets = [2, 0], sizes = [1, 128], strides = [1, 1]} : vector<4x128xf32> to vector<1x128xf32>
    %cst_3 = arith.constant 9.99999974E-6 : f32
    %12 = vector.broadcast %cst_3 : f32 to vector<1x128xf32>
    %13 = arith.addf %10, %12 : vector<1x128xf32>
    %14 = math.rsqrt %13 : vector<1x128xf32>
    %15 = arith.mulf %11, %14 : vector<1x128xf32>
    %16 = vector.extract_strided_slice %0 {offsets = [3, 0], sizes = [1, 128], strides = [1, 1]} : vector<4x128xf32> to vector<1x128xf32>
    %17 = arith.mulf %3, %15 : vector<1x128xf32>
    %18 = arith.subf %16, %17 : vector<1x128xf32>
    %c0_4 = arith.constant 0 : index
    %c0_5 = arith.constant 0 : index
    %19 = vector.load %arg1[%c0_4, %c0_5] : memref<128x128xbf16, #tpu.memory_space<vmem>>, vector<128x128xbf16>
    %20 = arith.extf %19 : vector<128x128xbf16> to vector<128x128xf32>
    %21 = vector.broadcast %15 : vector<1x128xf32> to vector<128x128xf32>
    %22 = arith.mulf %20, %21 : vector<128x128xf32>
    %23 = vector.broadcast %18 : vector<1x128xf32> to vector<128x128xf32>
    %24 = arith.addf %22, %23 : vector<128x128xf32>
    %cst_6 = arith.constant 0.000000e+00 : f32
    %25 = vector.broadcast %cst_6 : f32 to vector<128x128xf32>
    %26 = arith.maximumf %24, %25 : vector<128x128xf32>
    %c0_7 = arith.constant 0 : index
    %c0_8 = arith.constant 0 : index
    %27 = vector.load %arg3[%c0_7, %c0_8] : memref<128x128xf32, #tpu.memory_space<vmem>>, vector<128x128xf32>
    tpu.vector_store %arg3[%c0_7, %c0_8], %26 {strides = array<i32>} : memref<128x128xf32, #tpu.memory_space<vmem>>, vector<128x128xf32>,
    return
  }
  func.func @transform_0(%arg0: i32) -> (i32, i32) {
    %c0_i32 = arith.constant 0 : i32
    %c0_i32_0 = arith.constant 0 : i32
    return %arg0, %c0_i32 : i32, i32
  }
  func.func @transform_1(%arg0: i32) -> (i32, i32) {
    %c0_i32 = arith.constant 0 : i32
    %c0_i32_0 = arith.constant 0 : i32
    %c0_i32_1 = arith.constant 0 : i32
    return %c0_i32, %c0_i32_0 : i32, i32
  }
  func.func @transform_2(%arg0: i32) -> (i32, i32) {
    %c0_i32 = arith.constant 0 : i32
    %c0_i32_0 = arith.constant 0 : i32
    return %arg0, %c0_i32 : i32, i32
  }
}

</mosaic_0001>

<bundles_post_ra>
// kernel: dirac_basic_block.5
= control target key start
LH: loop header
LB: loop body
LE: loop exit
PB: predicated region body
PF: predicated region fallthrough
CT: control target
= control target key end

     0   :  { %s555_s9 = smov 0   ;;  %s592_s0 = inlined_call_operand.vmem [shape: bf16[512,128], index: 0, kind: input, shape index: {}]   ;;  %s593_s1 = inlined_call_operand.vmem [shape: f32[4,128], index: 1, kind: input, shape index: {}]   ;;  %s594_s2 = inlined_call_operand.vmem [shape: bf16[512,128], index: 2, kind: output, shape index: {}]  }
   0x1 LB: > { %s393_s10 = sadd.s32 4294967295, %s538_s9   ;;  %p397_p0 = scmp.ge.s32.totalorder %s538_s9, 1  ;;  %s538_s9 = sphi %s555_s9, %s12_s9  }
   0x2   : > { %p113_p1 = scmp.lt.s32.totalorder %s538_s9, 5 }
   0x4   : > { %p114_p2 = pnand %p397_p0, %p113_p1 }
   0x5   : > { %v147_v0 = vld [vmem:[%s593_s1] sm:$0xf] (!%p114_p2)  ;;  %s398_s13 = sshll.u32 (!%p114_p2), %s393_s10, 4  ;;  %v201_v7 = vlaneseq (!%p114_p2) }
   0x6   : > { %117 = sbr.rel (%p114_p2) target bundleno = 57 (0x39), region = 28  ;;  %v148_v1 = vmul.f32 (!%p114_p2), 0.001953125, %v147_v0  ;;  %p136_p3 = scmp.lt.s32.totalorder (!%p114_p2), %s398_s13, 63 }
   0x7   : > { %v202_v8 = vshrl.u32 (!%p114_p2), %v201_v7, 7 }
   0x8   : > { %v149_v2 = vmul.f32 (!%p114_p2), %v148_v1, %v148_v1 }
   0x9   : > { %v203_v12 = vsub.s32 (!%p114_p2), 2, %v202_v8  ;;  %v223_v19 = vsub.s32 (!%p114_p2), 3, %v202_v8 }
   0xa   : > { %v151_v3 = vrot.slane (!%p114_p2), %v149_v2, 7 }
   0xc   : > { %v153_v4 = vsub.f32 (!%p114_p2), %v148_v1, %v151_v3 }
   0xd   : > { %s596_s13 = smov (!%p136_p3, %s398_s13), 63 }
   0xe   : > { %v154_v5 = vmax.f32 %v153_v4, 0.0  ;;  %s399_s14 = sshll.u32 %s596_s13, 2 }
   0xf   : > { %s139_s17 = scalar_lea.vmem %s592_s0, %s399_s14  ;;  %s579_s20 = scalar_lea.vmem %s594_s2, %s399_s14 }
  0x10   : > { %v155_v6 = vadd.f32 1e-05, %v154_v5  ;;  %v437_v11 = vld [vmem:[%s139_s17] sm:$0xff]   ;;  %v508_v14 = vld [vmem:[%s139_s17 + $0x8] sm:$0xff]   ;;  %v509_v15 = vld [vmem:[%s139_s17 + $0x10] sm:$0xff]  }
  0x11   : > { %v510_v16 = vld [vmem:[%s139_s17 + $0x18] sm:$0xff]   ;;  %v438_v18 = vunpack.c.l.bf16 %v437_v11  ;;  %v511_v20 = vld [vmem:[%s139_s17 + $0x20] sm:$0xff]   ;;  %v512_v21 = vld [vmem:[%s139_s17 + $0x28] sm:$0xff]   ;;  %v439_v22 = vunpack.c.h.bf16 %v437_v11  ;;  %v442_v24 = vunpack.c.l.bf16 %v508_v14  ;;  %v443_v25 = vunpack.c.h.bf16 %v508_v14 }
  0x12   : > { %530 = vrsqrt.f32 %v155_v6  ;;  %v513_v26 = vld [vmem:[%s139_s17 + $0x30] sm:$0xff]   ;;  %v446_v28 = vunpack.c.l.bf16 %v509_v15  ;;  %v447_v29 = vunpack.c.h.bf16 %v509_v15  ;;  %v450_v30 = vunpack.c.l.bf16 %v510_v16  ;;  %v514_v31 = vld [vmem:[%s139_s17 + $0x38] sm:$0xff]  }
  0x13   : > { %v451_v32 = vunpack.c.h.bf16 %v510_v16  ;;  %v454_v33 = vunpack.c.l.bf16 %v511_v20  ;;  %v455_v34 = vunpack.c.h.bf16 %v511_v20  ;;  %v458_v35 = vunpack.c.l.bf16 %v512_v21 }
  0x14   : > { %v459_v37 = vunpack.c.h.bf16 %v512_v21  ;;  %v462_v38 = vunpack.c.l.bf16 %v513_v26  ;;  %v463_v39 = vunpack.c.h.bf16 %v513_v26  ;;  %v466_v42 = vunpack.c.l.bf16 %v514_v31 }
  0x15   : > { %v467_v43 = vunpack.c.h.bf16 %v514_v31 }
  0x1c   : > { %v531_v9 = vpop.eup %530 }
  0x1d   : > { %v158_v10 = vrot.slane %v531_v9, 7 }
  0x1f   : > { %v160_v13 = vmul.f32 %v158_v10, %v147_v0 }
  0x21   : > { %v162_v17 = vrot.slane %v160_v13, 2  ;;  %v204_v23 = vrot.slane %v160_v13, %v203_v12 }
  0x23   : > { %v164_v27 = vmul.f32 %v162_v17, %v148_v1  ;;  %v205_v40 = vmul.f32 %v438_v18, %v204_v23  ;;  %v206_v41 = vmul.f32 %v439_v22, %v204_v23  ;;  %v207_v45 = vmul.f32 %v442_v24, %v204_v23 }
  0x24   : > { %v208_v46 = vmul.f32 %v443_v25, %v204_v23  ;;  %v209_v47 = vmul.f32 %v446_v28, %v204_v23  ;;  %v210_v48 = vmul.f32 %v447_v29, %v204_v23  ;;  %v211_v49 = vmul.f32 %v450_v30, %v204_v23 }
  0x25   : > { %v166_v36 = vrot.slane %v164_v27, 5  ;;  %v212_v50 = vmul.f32 %v451_v32, %v204_v23  ;;  %v213_v51 = vmul.f32 %v454_v33, %v204_v23  ;;  %v214_v53 = vmul.f32 %v455_v34, %v204_v23 }
  0x26   : > { %v215_v54 = vmul.f32 %v458_v35, %v204_v23  ;;  %v216_v55 = vmul.f32 %v459_v37, %v204_v23  ;;  %v217_v56 = vmul.f32 %v462_v38, %v204_v23  ;;  %v218_v57 = vmul.f32 %v463_v39, %v204_v23 }
  0x27   : > { %v168_v44 = vsub.f32 %v147_v0, %v166_v36  ;;  %v219_v58 = vmul.f32 %v466_v42, %v204_v23  ;;  %v220_v59 = vmul.f32 %v467_v43, %v204_v23 }
  0x29   : > { %v224_v52 = vrot.slane %v168_v44, %v223_v19 }
  0x2b   : > { %v225_v60 = vadd.f32 %v224_v52, %v205_v40  ;;  %v226_v61 = vadd.f32 %v224_v52, %v206_v41  ;;  %v227_v62 = vadd.f32 %v224_v52, %v207_v45  ;;  %v228_v63 = vadd.f32 %v224_v52, %v208_v46 }
  0x2c   : > { %v229_v0 = vadd.f32 %v224_v52, %v209_v47  ;;  %v230_v1 = vadd.f32 %v224_v52, %v210_v48  ;;  %v231_v2 = vadd.f32 %v224_v52, %v211_v49  ;;  %v232_v3 = vadd.f32 %v224_v52, %v212_v50 }
  0x2d   : > { %v241_v4 = vmax.f32 %v225_v60, 0.0  ;;  %v242_v5 = vmax.f32 %v226_v61, 0.0  ;;  %v243_v6 = vmax.f32 %v227_v62, 0.0  ;;  %v244_v7 = vmax.f32 %v228_v63, 0.0 }
  0x2e   : > { %v245_v8 = vmax.f32 %v229_v0, 0.0  ;;  %v246_v9 = vmax.f32 %v230_v1, 0.0  ;;  %v247_v10 = vmax.f32 %v231_v2, 0.0  ;;  %v248_v11 = vmax.f32 %v232_v3, 0.0 }
  0x2f   : > { %v471_v12 = vpack.c.bf16 %v242_v5, %v241_v4  ;;  %v476_v13 = vpack.c.bf16 %v244_v7, %v243_v6  ;;  %v233_v14 = vadd.f32 %v224_v52, %v213_v51  ;;  %v234_v15 = vadd.f32 %v224_v52, %v214_v53 }
  0x30   : > { %v481_v16 = vpack.c.bf16 %v246_v9, %v245_v8  ;;  %v486_v17 = vpack.c.bf16 %v248_v11, %v247_v10  ;;  %v235_v18 = vadd.f32 %v224_v52, %v215_v54  ;;  %v236_v19 = vadd.f32 %v224_v52, %v216_v55 }
  0x31   : > { %472 = vst [vmem:[%s579_s20] sm:$0xff] %v471_v12   ;;  %515 = vst [vmem:[%s579_s20 + $0x8] sm:$0xff] %v476_v13   ;;  %v249_v20 = vmax.f32 %v233_v14, 0.0  ;;  %v250_v21 = vmax.f32 %v234_v15, 0.0  ;;  %v237_v22 = vadd.f32 %v224_v52, %v217_v56  ;;  %v238_v23 = vadd.f32 %v224_v52, %v218_v57 }
  0x32   : > { %516 = vst [vmem:[%s579_s20 + $0x10] sm:$0xff] %v481_v16   ;;  %517 = vst [vmem:[%s579_s20 + $0x18] sm:$0xff] %v486_v17   ;;  %v251_v24 = vmax.f32 %v235_v18, 0.0  ;;  %v252_v25 = vmax.f32 %v236_v19, 0.0  ;;  %v239_v26 = vadd.f32 %v224_v52, %v219_v58  ;;  %v240_v27 = vadd.f32 %v224_v52, %v220_v59 }
  0x33   : > { %v491_v28 = vpack.c.bf16 %v250_v21, %v249_v20  ;;  %v253_v29 = vmax.f32 %v237_v22, 0.0  ;;  %v254_v30 = vmax.f32 %v238_v23, 0.0 }
  0x34   : > { %v496_v31 = vpack.c.bf16 %v252_v25, %v251_v24  ;;  %v255_v32 = vmax.f32 %v239_v26, 0.0  ;;  %v256_v33 = vmax.f32 %v240_v27, 0.0 }
  0x35   : > { %518 = vst [vmem:[%s579_s20 + $0x20] sm:$0xff] %v491_v28   ;;  %v501_v34 = vpack.c.bf16 %v254_v30, %v253_v29 }
  0x36   : > { %519 = vst [vmem:[%s579_s20 + $0x28] sm:$0xff] %v496_v31   ;;  %v506_v35 = vpack.c.bf16 %v256_v33, %v255_v32 }
  0x37   : > { %520 = vst [vmem:[%s579_s20 + $0x30] sm:$0xff] %v501_v34  }
  0x38   : > { %521 = vst [vmem:[%s579_s20 + $0x38] sm:$0xff] %v506_v35  }
  0x39 PF: > { %s12_s9 = sadd.s32 1, %s538_s9  }
  0x3a   : > { %p9_p4 = scmp.ge.s32.totalorder %s12_s9, 6  }
  0x3c   :  { %11 = sbr.rel (!%p9_p4) target bundleno = 1 (0x1), region = 58 }

// kernel: dirac_basic_block.7
= control target key start
LH: loop header
LB: loop body
LE: loop exit
PB: predicated region body
PF: predicated region fallthrough
CT: control target
= control target key end

     0   :  { %s412_s9 = smov 0   ;;  %s454_s0 = inlined_call_operand.vmem [shape: bf16[512,128], index: 0, kind: input, shape index: {}]   ;;  %s455_s1 = inlined_call_operand.vmem [shape: f32[4,128], index: 1, kind: input, shape index: {}]   ;;  %s456_s2 = inlined_call_operand.vmem [shape: f32[512,128], index: 2, kind: output, shape index: {}]  }
   0x1 LB: > { %s329_s10 = sadd.s32 4294967295, %s395_s9   ;;  %p333_p0 = scmp.ge.s32.totalorder %s395_s9, 1  ;;  %s395_s9 = sphi %s412_s9, %s12_s9  }
   0x2   : > { %p113_p1 = scmp.lt.s32.totalorder %s395_s9, 5 }
   0x4   : > { %p114_p2 = pnand %p333_p0, %p113_p1 }
   0x5   : > { %v147_v0 = vld [vmem:[%s455_s1] sm:$0xf] (!%p114_p2)  ;;  %s334_s13 = sshll.u32 (!%p114_p2), %s329_s10, 4  ;;  %v201_v7 = vlaneseq (!%p114_p2) }
   0x6   : > { %117 = sbr.rel (%p114_p2) target bundleno = 55 (0x37), region = 28  ;;  %v148_v1 = vmul.f32 (!%p114_p2), 0.001953125, %v147_v0  ;;  %p136_p3 = scmp.lt.s32.totalorder (!%p114_p2), %s334_s13, 63 }
   0x7   : > { %v202_v8 = vshrl.u32 (!%p114_p2), %v201_v7, 7 }
   0x8   : > { %v149_v2 = vmul.f32 (!%p114_p2), %v148_v1, %v148_v1 }
   0x9   : > { %v203_v12 = vsub.s32 (!%p114_p2), 2, %v202_v8  ;;  %v223_v19 = vsub.s32 (!%p114_p2), 3, %v202_v8 }
   0xa   : > { %v151_v3 = vrot.slane (!%p114_p2), %v149_v2, 7 }
   0xc   : > { %v153_v4 = vsub.f32 (!%p114_p2), %v148_v1, %v151_v3 }
   0xd   : > { %s458_s13 = smov (!%p136_p3, %s334_s13), 63 }
   0xe   : > { %v154_v5 = vmax.f32 %v153_v4, 0.0  ;;  %s335_s14 = sshll.u32 %s458_s13, 2  ;;  %s337_s18 = sshll.u32 %s458_s13, 3 }
   0xf   : > { %s139_s17 = scalar_lea.vmem %s454_s0, %s335_s14  ;;  %s433_s21 = scalar_lea.vmem %s456_s2, %s337_s18 }
  0x10   : > { %v155_v6 = vadd.f32 1e-05, %v154_v5  ;;  %v341_v11 = vld [vmem:[%s139_s17] sm:$0xff]   ;;  %v372_v14 = vld [vmem:[%s139_s17 + $0x8] sm:$0xff]   ;;  %v373_v15 = vld [vmem:[%s139_s17 + $0x10] sm:$0xff]  }
  0x11   : > { %v374_v16 = vld [vmem:[%s139_s17 + $0x18] sm:$0xff]   ;;  %v342_v18 = vunpack.c.l.bf16 %v341_v11  ;;  %v375_v20 = vld [vmem:[%s139_s17 + $0x20] sm:$0xff]   ;;  %v376_v21 = vld [vmem:[%s139_s17 + $0x28] sm:$0xff]   ;;  %v343_v23 = vunpack.c.h.bf16 %v341_v11  ;;  %v346_v24 = vunpack.c.l.bf16 %v372_v14  ;;  %v347_v25 = vunpack.c.h.bf16 %v372_v14 }
  0x12   : > { %387 = vrsqrt.f32 %v155_v6  ;;  %v377_v26 = vld [vmem:[%s139_s17 + $0x30] sm:$0xff]   ;;  %v350_v28 = vunpack.c.l.bf16 %v373_v15  ;;  %v351_v29 = vunpack.c.h.bf16 %v373_v15  ;;  %v354_v30 = vunpack.c.l.bf16 %v374_v16  ;;  %v378_v31 = vld [vmem:[%s139_s17 + $0x38] sm:$0xff]  }
  0x13   : > { %v355_v32 = vunpack.c.h.bf16 %v374_v16  ;;  %v358_v33 = vunpack.c.l.bf16 %v375_v20  ;;  %v359_v34 = vunpack.c.h.bf16 %v375_v20  ;;  %v362_v35 = vunpack.c.l.bf16 %v376_v21 }
  0x14   : > { %v363_v37 = vunpack.c.h.bf16 %v376_v21  ;;  %v366_v38 = vunpack.c.l.bf16 %v377_v26  ;;  %v367_v39 = vunpack.c.h.bf16 %v377_v26  ;;  %v370_v42 = vunpack.c.l.bf16 %v378_v31 }
  0x15   : > { %v371_v43 = vunpack.c.h.bf16 %v378_v31 }
  0x1c   : > { %v388_v9 = vpop.eup %387 }
  0x1d   : > { %v158_v10 = vrot.slane %v388_v9, 7 }
  0x1f   : > { %v160_v13 = vmul.f32 %v158_v10, %v147_v0 }
  0x21   : > { %v162_v17 = vrot.slane %v160_v13, 2  ;;  %v204_v22 = vrot.slane %v160_v13, %v203_v12 }
  0x23   : > { %v164_v27 = vmul.f32 %v162_v17, %v148_v1  ;;  %v205_v40 = vmul.f32 %v342_v18, %v204_v22  ;;  %v206_v41 = vmul.f32 %v343_v23, %v204_v22  ;;  %v207_v45 = vmul.f32 %v346_v24, %v204_v22 }
  0x24   : > { %v208_v46 = vmul.f32 %v347_v25, %v204_v22  ;;  %v209_v47 = vmul.f32 %v350_v28, %v204_v22  ;;  %v210_v48 = vmul.f32 %v351_v29, %v204_v22  ;;  %v211_v49 = vmul.f32 %v354_v30, %v204_v22 }
  0x25   : > { %v166_v36 = vrot.slane %v164_v27, 5  ;;  %v212_v50 = vmul.f32 %v355_v32, %v204_v22  ;;  %v213_v51 = vmul.f32 %v358_v33, %v204_v22  ;;  %v214_v53 = vmul.f32 %v359_v34, %v204_v22 }
  0x26   : > { %v215_v54 = vmul.f32 %v362_v35, %v204_v22  ;;  %v216_v55 = vmul.f32 %v363_v37, %v204_v22  ;;  %v217_v56 = vmul.f32 %v366_v38, %v204_v22  ;;  %v218_v57 = vmul.f32 %v367_v39, %v204_v22 }
  0x27   : > { %v168_v44 = vsub.f32 %v147_v0, %v166_v36  ;;  %v219_v58 = vmul.f32 %v370_v42, %v204_v22  ;;  %v220_v59 = vmul.f32 %v371_v43, %v204_v22 }
  0x29   : > { %v224_v52 = vrot.slane %v168_v44, %v223_v19 }
  0x2b   : > { %v225_v60 = vadd.f32 %v224_v52, %v205_v40  ;;  %v226_v61 = vadd.f32 %v224_v52, %v206_v41  ;;  %v227_v62 = vadd.f32 %v224_v52, %v207_v45  ;;  %v228_v63 = vadd.f32 %v224_v52, %v208_v46 }
  0x2c   : > { %v229_v0 = vadd.f32 %v224_v52, %v209_v47  ;;  %v230_v1 = vadd.f32 %v224_v52, %v210_v48  ;;  %v231_v2 = vadd.f32 %v224_v52, %v211_v49  ;;  %v232_v3 = vadd.f32 %v224_v52, %v212_v50 }
  0x2d   : > { %v241_v4 = vmax.f32 %v225_v60, 0.0  ;;  %v242_v5 = vmax.f32 %v226_v61, 0.0  ;;  %v243_v6 = vmax.f32 %v227_v62, 0.0  ;;  %v244_v7 = vmax.f32 %v228_v63, 0.0 }
  0x2e   : > { %v245_v8 = vmax.f32 %v229_v0, 0.0  ;;  %v246_v9 = vmax.f32 %v230_v1, 0.0  ;;  %v247_v10 = vmax.f32 %v231_v2, 0.0  ;;  %v248_v11 = vmax.f32 %v232_v3, 0.0 }
  0x2f   : > { %257 = vst [vmem:[%s433_s21] sm:$0xff] %v241_v4  ;;  %258 = vst [vmem:[%s433_s21 + $0x8] sm:$0xff] %v242_v5  ;;  %v233_v12 = vadd.f32 %v224_v52, %v213_v51  ;;  %v234_v13 = vadd.f32 %v224_v52, %v214_v53  ;;  %v235_v14 = vadd.f32 %v224_v52, %v215_v54 }
  0x30   : > { %259 = vst [vmem:[%s433_s21 + $0x10] sm:$0xff] %v243_v6  ;;  %260 = vst [vmem:[%s433_s21 + $0x18] sm:$0xff] %v244_v7  ;;  %v236_v15 = vadd.f32 %v224_v52, %v216_v55  ;;  %v237_v16 = vadd.f32 %v224_v52, %v217_v56  ;;  %v238_v17 = vadd.f32 %v224_v52, %v218_v57 }
  0x31   : > { %261 = vst [vmem:[%s433_s21 + $0x20] sm:$0xff] %v245_v8  ;;  %262 = vst [vmem:[%s433_s21 + $0x28] sm:$0xff] %v246_v9  ;;  %v239_v18 = vadd.f32 %v224_v52, %v219_v58  ;;  %v240_v19 = vadd.f32 %v224_v52, %v220_v59  ;;  %v249_v20 = vmax.f32 %v233_v12, 0.0  ;;  %v250_v21 = vmax.f32 %v234_v13, 0.0 }
  0x32   : > { %263 = vst [vmem:[%s433_s21 + $0x30] sm:$0xff] %v247_v10  ;;  %264 = vst [vmem:[%s433_s21 + $0x38] sm:$0xff] %v248_v11  ;;  %v251_v22 = vmax.f32 %v235_v14, 0.0  ;;  %v252_v23 = vmax.f32 %v236_v15, 0.0  ;;  %v253_v24 = vmax.f32 %v237_v16, 0.0  ;;  %v254_v25 = vmax.f32 %v238_v17, 0.0 }
  0x33   : > { %v255_v26 = vmax.f32 %v239_v18, 0.0  ;;  %v256_v27 = vmax.f32 %v240_v19, 0.0  ;;  %265 = vst [vmem:[%s433_s21 + $0x40] sm:$0xff] %v249_v20  ;;  %266 = vst [vmem:[%s433_s21 + $0x48] sm:$0xff] %v250_v21 }
  0x34   : > { %267 = vst [vmem:[%s433_s21 + $0x50] sm:$0xff] %v251_v22  ;;  %268 = vst [vmem:[%s433_s21 + $0x58] sm:$0xff] %v252_v23 }
  0x35   : > { %269 = vst [vmem:[%s433_s21 + $0x60] sm:$0xff] %v253_v24  ;;  %270 = vst [vmem:[%s433_s21 + $0x68] sm:$0xff] %v254_v25 }
  0x36   : > { %271 = vst [vmem:[%s433_s21 + $0x70] sm:$0xff] %v255_v26  ;;  %272 = vst [vmem:[%s433_s21 + $0x78] sm:$0xff] %v256_v27 }
  0x37 PF: > { %s12_s9 = sadd.s32 1, %s395_s9  }
  0x38   : > { %p9_p4 = scmp.ge.s32.totalorder %s12_s9, 6  }
  0x3a   :  { %11 = sbr.rel (!%p9_p4) target bundleno = 1 (0x1), region = 58 }

// kernel: dirac_basic_block.4
= control target key start
LH: loop header
LB: loop body
LE: loop exit
PB: predicated region body
PF: predicated region fallthrough
CT: control target
= control target key end

     0   :  { %s4427_s18 = smov 0   ;;  %s4429_s19 = smov 0   ;;  %s5054_s0 = inlined_call_operand.vmem [shape: bf16[2,18,24,8], index: 0, kind: input, shape index: {}, may-alias: {0,1,2}]   ;;  %s5055_s1 = inlined_call_operand.vmem [shape: bf16[2,18,24,8], index: 1, kind: input, shape index: {}, may-alias: {0,1,2}]   ;;  %s5056_s2 = inlined_call_operand.vmem [shape: bf16[2,18,24,8], index: 2, kind: input, shape index: {}, may-alias: {0,1,2}]   ;;  %s5057_s3 = inlined_call_operand.vmem [shape: bf16[9,8,128], index: 3, kind: input, shape index: {}]   ;;  %s5058_s4 = inlined_call_operand.vmem [shape: bf16[2,2,128,128], index: 4, kind: output, shape index: {0}]   ;;  %s5059_s5 = inlined_call_operand.vmem [shape: f32[2,2,2,128], index: 5, kind: output, shape index: {1}]  }
   0x1   :  { %s4431_s20 = smov 0   ;;  %s4433_s21 = smov 0  }
   0x2   :  { %s4435_s22 = smov 0  }
   0x3 LB: > { %s25_s23 = sadd.s32 1, %s4387_s20  ;;  %s28_s24 = sadd.s32 1, %s4391_s21  ;;  %s4395_s22 = sphi %s4435_s22, %s16_s22   ;;  %s4391_s21 = sphi %s4433_s21, %s5069_s21   ;;  %s4387_s20 = sphi %s4431_s20, %s5068_s20   ;;  %s4383_s19 = sphi %s4429_s19, %s5067_s19   ;;  %s4379_s18 = sphi %s4427_s18, %s5066_s18  }
   0x4   : > { %p26_p0 = scmp.ge.s32.totalorder %s25_s23, 2  ;;  %p3636_p1 = scmp.ge.s32.totalorder %s4395_s22, 1 }
   0x5   : > { %p272_p2 = scmp.lt.s32.totalorder %s4395_s22, 5 }
   0x6   : > { %s5071_s23 = smov (%p26_p0, %s25_s23), 0  ;;  %s5073_s24 = smov (!%p26_p0, %s28_s24), %s4391_s21 }
   0x7   : > { %p273_p3 = pnand %p3636_p1, %p272_p2  ;;  %p30_p4 = scmp.ge.s32.totalorder %s5073_s24, 2 }
   0x8   : > { %v488_v0 = vld [vmem:[%s5057_s3] sm:$0xf] (!%p273_p3)  ;;  %vm554_vm0 = vcmask (!%p273_p3), 1043456   ;;  %s4463_s27 = sshll.u32 (!%p273_p3), %s4379_s18, 3  ;;  %p350_p5 = scmp.lt.s32.totalorder (!%p273_p3), %s4383_s19, 1  ;;  %vm433_vm1 = vcmask (!%p273_p3), 60416  }
   0x9   : > { %s5075_s24 = smov (%p30_p4, %s5073_s24), 0  ;;  %276 = sbr.rel (%p273_p3) target bundleno = 438 (0x1b6), region = 36 }
   0xa   : > { %4278 = vmatprep.subr.msk.bf16.mxu1 (!%p273_p3), %vm554_vm0, %v488_v0  ;;  %v556_v1 = vsel (!%p273_p3), %vm554_vm0, %v488_v0, 0  ;;  %p352_p6 = scmp.lt.s32.totalorder (!%p273_p3), %s4463_s27, 17  ;;  %v3723_v2 = vld [vmem:[%s5057_s3 + $0x10] sm:$0xf] (!%p273_p3)  ;;  %v3664_v4 = vld [vmem:[%s5057_s3 + $0x4] sm:$0xf] (!%p273_p3) }
   0xb   : > { %3987 = vmatpush3.bf16.msra.mxu1 (!%p273_p3), %v556_v1  ;;  %4282 = vmatprep.subr.msk.bf16.mxu0 (!%p273_p3), %vm554_vm0, %v3723_v2  ;;  %v4475_v3 = vsel (!%p273_p3), %vm554_vm0, %v3723_v2, 0  ;;  %v3748_v5 = vld [vmem:[%s5057_s3 + $0x14] sm:$0xf] (!%p273_p3)  ;;  %v4493_v6 = vld [vmem:[%s5057_s3 + $0x18] sm:$0xf] (!%p273_p3)  ;;  %s379_s16 = sadd.s32 (!%p273_p3), 9, %s4463_s27 }
   0xc   : > { %4059 = vmatpush3.bf16.msra.mxu0 (!%p273_p3), %v4475_v3  ;;  %4279 = vmatprep.subr.msk.bf16.mxu1 (!%p273_p3), %vm554_vm0, %v3664_v4  ;;  %v4498_v7 = vld [vmem:[%s5057_s3 + $0x8] sm:$0xf] (!%p273_p3)  ;;  %vm529_vm2 = vcmask (!%p273_p3), 64512   ;;  %v4508_v8 = vsel (!%p273_p3), %vm554_vm0, %v3664_v4, 0  ;;  %v4511_v9 = vsel (!%p273_p3), %vm554_vm0, %v3748_v5, 0  ;;  %v4515_v10 = vsel (!%p273_p3), %vm554_vm0, %v4493_v6, 0 }
   0xd   : > { %4284 = vmatprep.subr.msk.bf16.mxu0 (!%p273_p3), %vm554_vm0, %v3748_v5  ;;  %v4519_v11 = vsel (!%p273_p3), %vm554_vm0, %v4498_v7, 0  ;;  %p4523_p7 = scmp.lt.s32.totalorder (!%p273_p3), %s379_s16, 17  ;;  %v4551_v24 = vld [vmem:[%s5057_s3 + $0x1c] sm:$0xf] (!%p273_p3)  ;;  %v4568_v31 = vld [vmem:[%s5057_s3 + $0xc] sm:$0xf] (!%p273_p3) }
   0xe   : > { %v4579_v35 = vld [vmem:[%s5057_s3 + $0x20] sm:$0xf] (!%p273_p3)  ;;  %vm695_vm3 = vsmask.f32 (!%p273_p3), 3328  ;;  %vm696_vm4 = vsmask.f32 (!%p273_p3), 7440 }
   0xf   : > { %v4592_v40 = vsel (!%p273_p3), %vm554_vm0, %v4551_v24, 0  ;;  %v4601_v43 = vsel (!%p273_p3), %vm554_vm0, %v4568_v31, 0  ;;  %v4606_v44 = vsel (!%p273_p3), %vm554_vm0, %v4579_v35, 0  ;;  %vm1136_vm5 = vcmask (!%p273_p3), 1042432   ;;  %vm4617_vm7 = vmor (!%p273_p3), %vm695_vm3, %vm696_vm4  ;;  %s366_s15 = sadd.s32 (!%p273_p3), 8, %s4463_s27  ;;  %p393_p9 = scmp.lt.s32.totalorder (!%p273_p3), %s4379_s18, 1 }
  0x10   : > { %s5077_s19 = smov (!%p350_p5, %s4383_s19), 1  ;;  %s5079_s16 = smov (!%p4523_p7, %s379_s16), 17  ;;  %vm1137_vm6 = vcmask 1046532   ;;  %vm3441_vm9 = vcmask 1040384  }
  0x11   : > { %s353_s7 = scalar_select %p352_p6, %s4463_s27, 17  ;;  %vm4636_vm8 = vmor %vm1136_vm5, %vm1137_vm6 }
  0x12   : > { %s4487_s10 = smul.u32 54, %s5077_s19  ;;  %p4653_p8 = scmp.lt.s32.totalorder %s366_s15, 17 }
  0x13   : > { %s4288_s11 = smul.u32 3, %s353_s7  ;;  %s5083_s18 = smov (!%p393_p9, %s4379_s18), 1 }
  0x14   : > { %s4291_s13 = smul.u32 3, %s5079_s16  ;;  %s5081_s15 = smov (!%p4653_p8, %s366_s15), 17 }
  0x15   : > { %s356_s17 = sadd.s32 %s4487_s10, %s4288_s11  ;;  %s4290_s27 = smul.u32 3, %s5081_s15 }
  0x16   : > { %s3638_s25 = sshll.u32 %s356_s17, 2  ;;  %s4613_s14 = sadd.s32 %s4291_s13, %s4487_s10 }
  0x17   : > { %s4505_s29 = scalar_lea.vmem %s5054_s0, %s3638_s25  ;;  %s4688_s17 = sadd.s32 %s4290_s27, %s4487_s10 }
  0x18   : > { %v409_v12 = vld [vmem:[%s4505_s29] sm:$0xf]  ;;  %v410_v13 = vld [vmem:[%s4505_s29 + $0x4] sm:$0xf]  ;;  %v412_v14 = vld [vmem:[%s4505_s29 + $0xc] sm:$0xf] }
  0x19   : > { %434 = vst.msk [vmem:[#allocation2] sm:$0xf] %vm433_vm1, %v409_v12  ;;  %435 = vst.msk [vmem:[#allocation2 + $0x4] sm:$0xf] %vm433_vm1, %v410_v13  ;;  %v413_v15 = vld [vmem:[%s4505_s29 + $0x10] sm:$0xf] }
  0x1a   : > { %437 = vst.msk [vmem:[#allocation2 + $0xc] sm:$0xf] %vm433_vm1, %v412_v14  ;;  %v415_v16 = vld [vmem:[%s4505_s29 + $0x18] sm:$0xf]  ;;  %v416_v17 = vld [vmem:[%s4505_s29 + $0x1c] sm:$0xf] }
  0x1b   : > { %438 = vst.msk [vmem:[#allocation2 + $0x10] sm:$0xf] %vm433_vm1, %v413_v15  ;;  %440 = vst.msk [vmem:[#allocation2 + $0x18] sm:$0xf] %vm433_vm1, %v415_v16  ;;  %v418_v18 = vld [vmem:[%s4505_s29 + $0x24] sm:$0xf] }
  0x1c   : > { %441 = vst.msk [vmem:[#allocation2 + $0x1c] sm:$0xf] %vm433_vm1, %v416_v17  ;;  %v419_v19 = vld [vmem:[%s4505_s29 + $0x28] sm:$0xf]  ;;  %v414_v20 = vld [vmem:[%s4505_s29 + $0x14] sm:$0xf] }
  0x1d   : > { %443 = vst.msk [vmem:[#allocation2 + $0x24] sm:$0xf] %vm433_vm1, %v418_v18  ;;  %444 = vst.msk [vmem:[#allocation2 + $0x28] sm:$0xf] %vm433_vm1, %v419_v19  ;;  %v417_v21 = vld [vmem:[%s4505_s29 + $0x20] sm:$0xf] }
  0x1e   : > { %439 = vst.msk [vmem:[#allocation2 + $0x14] sm:$0xf] %vm433_vm1, %v414_v20  ;;  %v421_v22 = vld [vmem:[%s4505_s29 + $0x30] sm:$0xf]  ;;  %v422_v23 = vld [vmem:[%s4505_s29 + $0x34] sm:$0xf] }
  0x1f   : > { %442 = vst.msk [vmem:[#allocation2 + $0x20] sm:$0xf] %vm433_vm1, %v417_v21  ;;  %446 = vst.msk [vmem:[#allocation2 + $0x30] sm:$0xf] %vm433_vm1, %v421_v22  ;;  %v424_v25 = vld [vmem:[%s4505_s29 + $0x3c] sm:$0xf] }
  0x20   : > { %447 = vst.msk [vmem:[#allocation2 + $0x34] sm:$0xf] %vm433_vm1, %v422_v23  ;;  %v425_v26 = vld [vmem:[%s4505_s29 + $0x40] sm:$0xf]  ;;  %v420_v27 = vld [vmem:[%s4505_s29 + $0x2c] sm:$0xf] }
  0x21   : > { %449 = vst.msk [vmem:[#allocation2 + $0x3c] sm:$0xf] %vm433_vm1, %v424_v25  ;;  %450 = vst.msk [vmem:[#allocation2 + $0x40] sm:$0xf] %vm433_vm1, %v425_v26  ;;  %v423_v28 = vld [vmem:[%s4505_s29 + $0x38] sm:$0xf] }
  0x22   : > { %445 = vst.msk [vmem:[#allocation2 + $0x2c] sm:$0xf] %vm433_vm1, %v420_v27  ;;  %v427_v29 = vld [vmem:[%s4505_s29 + $0x48] sm:$0xf]  ;;  %v428_v30 = vld [vmem:[%s4505_s29 + $0x4c] sm:$0xf] }
  0x23   : > { %448 = vst.msk [vmem:[#allocation2 + $0x38] sm:$0xf] %vm433_vm1, %v423_v28  ;;  %452 = vst.msk [vmem:[#allocation2 + $0x48] sm:$0xf] %vm433_vm1, %v427_v29  ;;  %v430_v32 = vld [vmem:[%s4505_s29 + $0x54] sm:$0xf] }
  0x24   : > { %453 = vst.msk [vmem:[#allocation2 + $0x4c] sm:$0xf] %vm433_vm1, %v428_v30  ;;  %v431_v33 = vld [vmem:[%s4505_s29 + $0x58] sm:$0xf]  ;;  %v411_v34 = vld [vmem:[%s4505_s29 + $0x8] sm:$0xf] }
  0x25   : > { %455 = vst.msk [vmem:[#allocation2 + $0x54] sm:$0xf] %vm433_vm1, %v430_v32  ;;  %456 = vst.msk [vmem:[#allocation2 + $0x58] sm:$0xf] %vm433_vm1, %v431_v33  ;;  %v426_v36 = vld [vmem:[%s4505_s29 + $0x44] sm:$0xf] }
  0x26   : > { %436 = vst.msk [vmem:[#allocation2 + $0x8] sm:$0xf] %vm433_vm1, %v411_v34  ;;  %v429_v37 = vld [vmem:[%s4505_s29 + $0x50] sm:$0xf]  ;;  %v432_v38 = vld [vmem:[%s4505_s29 + $0x5c] sm:$0xf] }
  0x27   : > { %v4332_v39 = vld [vmem:[#allocation2] sm:$0xff]   ;;  %451 = vst.msk [vmem:[#allocation2 + $0x44] sm:$0xf] %vm433_vm1, %v426_v36  ;;  %454 = vst.msk [vmem:[#allocation2 + $0x50] sm:$0xf] %vm433_vm1, %v429_v37  ;;  %v4333_v41 = vld [vmem:[#allocation2 + $0xc] sm:$0xff]  }
  0x28   : > { %457 = vst.msk [vmem:[#allocation2 + $0x5c] sm:$0xf] %vm433_vm1, %v432_v38  ;;  %3988 = vmatprep.mubr.msk.bf16.mxu1 %vm529_vm2, %v4332_v39  ;;  %v4334_v42 = vld [vmem:[#allocation2 + $0x18] sm:$0xff]   ;;  %v1624_v45 = vld [vmem:[#allocation2 + $0xc] sm:$0xf]  ;;  %v4335_v48 = vld [vmem:[#allocation2 + $0x24] sm:$0xff]  }
  0x29   : > { %3989 = vmatmul.mubr.msk.bf16.vlgmr.msra.gmra.mrb[0].mxu1 %vm529_vm2, %v4333_v41  ;;  %v1625_v46 = vld [vmem:[#allocation2 + $0x10] sm:$0xf]  ;;  %v1626_v47 = vld [vmem:[#allocation2 + $0x14] sm:$0x1]  ;;  %v1649_v49 = vshrl.u32 %v1624_v45, 16  ;;  %v1652_v50 = vshll.u32 %v1624_v45, 16 }
  0x2a   : > { %3992 = vmatprep.mubr.msk.bf16.mxu1 %vm529_vm2, %v4334_v42  ;;  %4005 = vmatpush3.bf16.msra.mxu1 %v4508_v8  ;;  %v1658_v51 = vshll.u32 %v1625_v46, 16  ;;  %v1662_v52 = vshrl.u32 %v1625_v46, 16  ;;  %v1627_v53 = vld [vmem:[#allocation2 + $0x18] sm:$0xf]  ;;  %v1668_v54 = vshll.u32 %v1626_v47, 16  ;;  %v4336_v8 = vld [vmem:[#allocation2 + $0x30] sm:$0xff]  }
  0x2b   : > { %4280 = vmatprep.subr.msk.bf16.mxu1 %vm554_vm0, %v4498_v7  ;;  %v1628_v55 = vld [vmem:[#allocation2 + $0x1c] sm:$0xf]  ;;  %v1629_v56 = vld [vmem:[#allocation2 + $0x20] sm:$0x1]  ;;  %v1673_v57 = vshrl.u32 %v1627_v53, 16  ;;  %v1651_v58 = vrot.slane %v1649_v49, 4 }
  0x2c   : > { %v1654_v59 = vrot.slane %v1652_v50, 5  ;;  %v1660_v60 = vrot.slane %v1658_v51, 5  ;;  %v1664_v61 = vrot.slane %v1662_v52, 4  ;;  %v1670_v62 = vrot.slane %v1668_v54, 5  ;;  %v1630_v15 = vld [vmem:[#allocation2 + $0x24] sm:$0xf] }
  0x2d   : > { %v1675_v63 = vrot.slane %v1673_v57, 4  ;;  %v1676_v0 = vshll.u32 %v1627_v53, 16  ;;  %v1682_v1 = vshll.u32 %v1628_v55, 16  ;;  %v1686_v5 = vshrl.u32 %v1628_v55, 16  ;;  %v1631_v20 = vld [vmem:[#allocation2 + $0x28] sm:$0xf] }
  0x2e   : > { %v1655_v2 = vor.u32 %v1654_v59, %v1651_v58  ;;  %v1665_v4 = vor.u32 %v1664_v61, %v1660_v60  ;;  %v1692_v7 = vshll.u32 %v1629_v56, 16  ;;  %v1632_v22 = vld [vmem:[#allocation2 + $0x2c] sm:$0x1]  ;;  %v1697_v23 = vshrl.u32 %v1630_v15, 16  ;;  %v4337_v30 = vld [vmem:[#allocation2 + $0x3c] sm:$0xff]   ;;  %s3640_s10 = sshll.u32 %s4688_s17, 2 }
  0x2f   : > { %v1678_v13 = vrot.slane %v1676_v0, 5  ;;  %v1684_v14 = vrot.slane %v1682_v1, 5  ;;  %v1688_v18 = vrot.slane %v1686_v5, 4  ;;  %v1700_v25 = vshll.u32 %v1630_v15, 16  ;;  %v1633_v33 = vld [vmem:[#allocation2 + $0x30] sm:$0xf]  ;;  %s375_s28 = scalar_lea.vmem %s5055_s1, %s3640_s10 }
  0x30   : > { %v1656_v16 = vrot.slane %v1655_v2, 4  ;;  %v1666_v17 = vrot.slane %v1665_v4, 4  ;;  %v1694_v19 = vrot.slane %v1692_v7, 5  ;;  %v1706_v26 = vshll.u32 %v1631_v20, 16  ;;  %v1634_v34 = vld [vmem:[#allocation2 + $0x34] sm:$0xf] }
  0x31   : > { %3993 = vmatmul.mubr.msk.bf16.gmra.mrb[4].mxu1 %vm529_vm2, %v4335_v48  ;;  %v1679_v21 = vor.u32 %v1678_v13, %v1675_v63  ;;  %v1689_v29 = vor.u32 %v1688_v18, %v1684_v14  ;;  %v1710_v32 = vshrl.u32 %v1631_v20, 16  ;;  %v1699_v38 = vrot.slane %v1697_v23, 4  ;;  %v1635_v41 = vld [vmem:[#allocation2 + $0x38] sm:$0x1]  ;;  %v4338_v42 = vld [vmem:[#allocation2 + $0x48] sm:$0xff]   ;;  %s3642_s29 = sshll.u32 %s4613_s14, 2 }
  0x32   : > { %3996 = vmatprep.mubr.msk.bf16.mxu1 %vm529_vm2, %v4336_v8  ;;  %v1661_v27 = vsel %vm4617_vm7, %v1656_v16, %v1660_v60  ;;  %v1671_v28 = vsel %vm4617_vm7, %v1666_v17, %v1670_v62  ;;  %v1702_v39 = vrot.slane %v1700_v25, 5  ;;  %v1708_v46 = vrot.slane %v1706_v26, 5  ;;  %v2038_v57 = vld [vmem:[#allocation2 + $0xc] sm:$0xe]  ;;  %v2039_v62 = vld [vmem:[#allocation2 + $0x10] sm:$0xf]  ;;  %s388_s7 = scalar_lea.vmem %s5056_s2, %s3642_s29 }
  0x33   : > { %v3724_v36 = vcombine.low %v1661_v27, %v1671_v28  ;;  %v1680_v37 = vrot.slane %v1679_v21, 4  ;;  %v1690_v45 = vrot.slane %v1689_v29, 4  ;;  %v1712_v47 = vrot.slane %v1710_v32, 4  ;;  %v2040_v5 = vld [vmem:[#allocation2 + $0x14] sm:$0x1]  ;;  %s3643_s11 = sshll.u32 %s5083_s18, 4 }
  0x34   : > { %v1716_v48 = vshll.u32 %v1632_v22, 16  ;;  %v1703_v50 = vor.u32 %v1702_v39, %v1699_v38  ;;  %v1721_v51 = vshrl.u32 %v1633_v33, 16  ;;  %v1724_v52 = vshll.u32 %v1633_v33, 16  ;;  %v2041_v15 = vld [vmem:[#allocation2 + $0x18] sm:$0xe]  ;;  %s3644_s12 = sshll.u32 %s5077_s19, 5 }
  0x35   : > { %4060 = vmatprep.mubr.msk.bf16.mxu0 %vm529_vm2, %v3724_v36  ;;  %v1685_v49 = vsel %vm4617_vm7, %v1680_v37, %v1684_v14  ;;  %v1695_v53 = vsel %vm4617_vm7, %v1690_v45, %v1694_v19  ;;  %v1713_v54 = vor.u32 %v1712_v47, %v1708_v46  ;;  %v1730_v56 = vshll.u32 %v1634_v34, 16  ;;  %v2042_v16 = vld [vmem:[#allocation2 + $0x1c] sm:$0xf]  ;;  %v2043_v21 = vld [vmem:[#allocation2 + $0x20] sm:$0x1]  ;;  %v4339_v28 = vld [vmem:[#allocation2 + $0x54] sm:$0xff]   ;;  %s397_s13 = sadd.s32 %s3644_s12, %s3643_s11 }
  0x36   : > { %v1718_v55 = vrot.slane %v1716_v48, 5  ;;  %v3725_v58 = vcombine.low %v1685_v49, %v1695_v53  ;;  %v1704_v59 = vrot.slane %v1703_v50, 4  ;;  %v1723_v60 = vrot.slane %v1721_v51, 4  ;;  %v671_v27 = vld [vmem:[#allocation2] sm:$0xf]  ;;  %s3645_s14 = sshll.u32 %s397_s13, 2 }
  0x37   : > { %v1726_v61 = vrot.slane %v1724_v52, 5  ;;  %v1714_v63 = vrot.slane %v1713_v54, 4  ;;  %v1732_v0 = vrot.slane %v1730_v56, 5  ;;  %v1734_v1 = vshrl.u32 %v1634_v34, 16  ;;  %v672_v33 = vld [vmem:[#allocation2 + $0x4] sm:$0xf]  ;;  %s5024_s27 = scalar_lea.vmem %s5058_s4, %s3645_s14 }
  0x38   : > { %v1740_v2 = vshll.u32 %v1635_v41, 16  ;;  %4061 = vmatmul.mubr.msk.bf16.vlgmr.msra.gmra.mrb[0].mxu0 %vm529_vm2, %v3725_v58  ;;  %v1709_v7 = vsel %vm4617_vm7, %v1704_v59, %v1708_v46  ;;  %v3740_v13 = vrot.slane %v2038_v57, 9  ;;  %v2088_v14 = vrot.slane %v2039_v62, 5  ;;  %v673_v36 = vld [vmem:[#allocation2 + $0x8] sm:$0x1]  ;;  %s3646_s17 = sshll.u32 %s5077_s19, 1 }
  0x39   : > { %3997 = vmatmul.mubr.msk.bf16.gmra.mrb[8].mxu1 %vm529_vm2, %v4337_v30  ;;  %v1727_v8 = vor.u32 %v1726_v61, %v1723_v60  ;;  %4077 = vmatpush3.bf16.msra.mxu0 %v4511_v9  ;;  %v1719_v17 = vsel %vm4617_vm7, %v1714_v63, %v1718_v55  ;;  %v1736_v18 = vrot.slane %v1734_v1, 4  ;;  %v2091_v20 = vrot.slane %v2040_v5, 5  ;;  %v674_v39 = vld [vmem:[#allocation2 + $0xc] sm:$0xf]  ;;  %v675_v54 = vld [vmem:[#allocation2 + $0x10] sm:$0xf]  ;;  %s405_s10 = sadd.s32 %s3646_s17, %s5083_s18 }
  0x3a   : > { %4000 = vmatprep.mubr.msk.bf16.mxu1 %vm529_vm2, %v4338_v42  ;;  %v1742_v19 = vrot.slane %v1740_v2, 5  ;;  %v3726_v22 = vcombine.low %v1709_v7, %v1719_v17  ;;  %v2089_v25 = vsel %vm4636_vm8, %v3740_v13, %v2088_v14  ;;  %v2090_v26 = vrot.slane %v2088_v14, 4  ;;  %4285 = vmatprep.subr.msk.bf16.mxu0 %vm554_vm0, %v4493_v6  ;;  %v676_v55 = vld [vmem:[#allocation2 + $0x14] sm:$0x1]  ;;  %v2044_v61 = vld [vmem:[#allocation2 + $0x24] sm:$0xe] }
  0x3b   : > { %v1728_v23 = vrot.slane %v1727_v8, 4  ;;  %v1737_v9 = vor.u32 %v1736_v18, %v1732_v0  ;;  %v3741_v29 = vrot.slane %v2041_v15, 9  ;;  %v2095_v30 = vrot.slane %v2042_v16, 5  ;;  %v2045_v62 = vld [vmem:[#allocation2 + $0x28] sm:$0xf]  ;;  %s3647_s25 = sshll.u32 %s405_s10, 1 }
  0x3c   : > { %v2098_v32 = vrot.slane %v2043_v21, 5  ;;  %4064 = vmatprep.mubr.msk.bf16.mxu0 %vm529_vm2, %v3726_v22  ;;  %v2092_v6 = vsel %vm4636_vm8, %v2090_v26, %v2091_v20  ;;  %v699_v37 = vshrl.u32 %v671_v27, 16  ;;  %v702_v38 = vshll.u32 %v671_v27, 16  ;;  %v2046_v5 = vld [vmem:[#allocation2 + $0x2c] sm:$0x1]  ;;  %s407_s29 = scalar_lea.vmem %s5059_s5, %s3647_s25 }
  0x3d   : > { %v1733_v34 = vsel %vm4617_vm7, %v1728_v23, %v1732_v0  ;;  %v1738_v41 = vrot.slane %v1737_v9, 4  ;;  %v3749_v42 = vcombine.low %v2089_v25, %v2092_v6  ;;  %v4664_v45 = vsel %vm4636_vm8, %v3741_v29, %v2095_v30  ;;  %v2047_v7 = vld [vmem:[#allocation2 + $0x30] sm:$0xe]  ;;  %v2048_v16 = vld [vmem:[#allocation2 + $0x34] sm:$0xf] }
  0x3e   : > { %v2097_v46 = vrot.slane %v2095_v30, 4  ;;  %v701_v47 = vrot.slane %v699_v37, 4  ;;  %v704_v48 = vrot.slane %v702_v38, 5  ;;  %v708_v49 = vshll.u32 %v672_v33, 16  ;;  %v2049_v21 = vld [vmem:[#allocation2 + $0x38] sm:$0x1] }
  0x3f   : > { %v712_v50 = vshrl.u32 %v672_v33, 16  ;;  %v1743_v51 = vsel %vm4617_vm7, %v1738_v41, %v1742_v19  ;;  %v718_v53 = vshll.u32 %v673_v36, 16  ;;  %v723_v56 = vshrl.u32 %v674_v39, 16  ;;  %v677_v27 = vld [vmem:[#allocation2 + $0x18] sm:$0xf] }
  0x40   : > { %v2099_v52 = vsel %vm4636_vm8, %v2097_v46, %v2098_v32  ;;  %v3727_v57 = vcombine.low %v1733_v34, %v1743_v51  ;;  %v705_v59 = vor.u32 %v704_v48, %v701_v47  ;;  %v710_v60 = vrot.slane %v708_v49, 5  ;;  %v679_v48 = vld [vmem:[#allocation2 + $0x20] sm:$0x1]  ;;  %v680_v49 = vld [vmem:[#allocation2 + $0x24] sm:$0xf] }
  0x41   : > { %4001 = vmatmul.mubr.msk.bf16.gmra.mrb[12].mxu1 %vm529_vm2, %v4339_v28  ;;  %v3750_v58 = vcombine.low %v4664_v45, %v2099_v52  ;;  %v714_v63 = vrot.slane %v712_v50, 4  ;;  %v720_v0 = vrot.slane %v718_v53, 5  ;;  %v725_v1 = vrot.slane %v723_v56, 4 }
  0x42   : > { %v726_v2 = vshll.u32 %v674_v39, 16  ;;  %4065 = vmatmul.mubr.msk.bf16.gmra.mrb[4].mxu0 %vm529_vm2, %v3727_v57  ;;  %v706_v8 = vrot.slane %v705_v59, 4  ;;  %v732_v13 = vshll.u32 %v675_v54, 16  ;;  %v736_v14 = vshrl.u32 %v675_v54, 16  ;;  %v678_v39 = vld [vmem:[#allocation2 + $0x1c] sm:$0xf] }
  0x43   : > { %v742_v15 = vshll.u32 %v676_v55, 16  ;;  %4078 = vmatprep.mubr.msk.bf16.mxu0 %vm529_vm2, %v3749_v42  ;;  %v715_v17 = vor.u32 %v714_v63, %v710_v60  ;;  %v3742_v19 = vrot.slane %v2044_v61, 9  ;;  %v2102_v20 = vrot.slane %v2045_v62, 5  ;;  %v681_v59 = vld [vmem:[#allocation2 + $0x28] sm:$0xf] }
  0x44   : > { %v728_v18 = vrot.slane %v726_v2, 5  ;;  %v711_v22 = vsel %vm4617_vm7, %v706_v8, %v710_v60  ;;  %v734_v23 = vrot.slane %v732_v13, 5  ;;  %v738_v25 = vrot.slane %v736_v14, 4  ;;  %v2051_v8 = vld [vmem:[#allocation2 + $0x40] sm:$0xf] }
  0x45   : > { %v744_v26 = vrot.slane %v742_v15, 5  ;;  %v716_v9 = vrot.slane %v715_v17, 4  ;;  %v2103_v29 = vsel %vm4636_vm8, %v3742_v19, %v2102_v20  ;;  %v2104_v30 = vrot.slane %v2102_v20, 4 }
  0x46   : > { %v729_v28 = vor.u32 %v728_v18, %v725_v1  ;;  %v739_v32 = vor.u32 %v738_v25, %v734_v23  ;;  %v2105_v33 = vrot.slane %v2046_v5, 5  ;;  %v3743_v34 = vrot.slane %v2047_v7, 9 }
  0x47   : > { %v2109_v6 = vrot.slane %v2048_v16, 5  ;;  %v721_v36 = vsel %vm4617_vm7, %v716_v9, %v720_v0  ;;  %v2112_v38 = vrot.slane %v2049_v21, 5  ;;  %v747_v41 = vshrl.u32 %v677_v27, 16  ;;  %v2050_v0 = vld [vmem:[#allocation2 + $0x3c] sm:$0xe] }
  0x48   : > { %v730_v37 = vrot.slane %v729_v28, 4  ;;  %v3665_v42 = vcombine.low %v711_v22, %v721_v36  ;;  %v740_v45 = vrot.slane %v739_v32, 4  ;;  %v2106_v46 = vsel %vm4636_vm8, %v2104_v30, %v2105_v33  ;;  %v2052_v16 = vld [vmem:[#allocation2 + $0x44] sm:$0x1]  ;;  %v2053_v21 = vld [vmem:[#allocation2 + $0x48] sm:$0xe] }
  0x49   : > { %v2110_v47 = vsel %vm4636_vm8, %v3743_v34, %v2109_v6  ;;  %v3751_v51 = vcombine.low %v2103_v29, %v2106_v46  ;;  %v2111_v52 = vrot.slane %v2109_v6, 4  ;;  %v749_v53 = vrot.slane %v747_v41, 4  ;;  %v2054_v22 = vld [vmem:[#allocation2 + $0x4c] sm:$0xf]  ;;  %v683_v32 = vld [vmem:[#allocation2 + $0x30] sm:$0xf] }
  0x4a   : > { %v735_v50 = vsel %vm4617_vm7, %v730_v37, %v734_v23  ;;  %4079 = vmatmul.mubr.msk.bf16.vlgmr.msra.gmra.mrb[0].mxu0 %vm529_vm2, %v3750_v58  ;;  %4006 = vmatprep.mubr.msk.bf16.mxu1 %vm529_vm2, %v3665_v42  ;;  %v745_v54 = vsel %vm4617_vm7, %v740_v45, %v744_v26  ;;  %v750_v55 = vshll.u32 %v677_v27, 16  ;;  %v756_v56 = vshll.u32 %v678_v39, 16  ;;  %v682_v58 = vld [vmem:[#allocation2 + $0x2c] sm:$0x1]  ;;  %v2055_v27 = vld [vmem:[#allocation2 + $0x50] sm:$0x1] }
  0x4b   : > { %v760_v57 = vshrl.u32 %v678_v39, 16  ;;  %4095 = vmatpush3.bf16.msra.mxu0 %v4515_v10  ;;  %v3666_v60 = vcombine.low %v735_v50, %v745_v54  ;;  %4082 = vmatprep.mubr.msk.bf16.mxu0 %vm529_vm2, %v3751_v51  ;;  %v2113_v61 = vsel %vm4636_vm8, %v2111_v52, %v2112_v38  ;;  %v766_v62 = vshll.u32 %v679_v48, 16  ;;  %v458_v36 = vld [vmem:[%s375_s28] sm:$0xf]  ;;  %v459_v37 = vld [vmem:[%s375_s28 + $0x4] sm:$0xf] }
  0x4c   : > { %v771_v63 = vshrl.u32 %v680_v49, 16  ;;  %v3752_v1 = vcombine.low %v2110_v47, %v2113_v61  ;;  %v752_v2 = vrot.slane %v750_v55, 5  ;;  %v758_v5 = vrot.slane %v756_v56, 5  ;;  %4286 = vmatprep.subr.msk.bf16.mxu0 %vm554_vm0, %v4551_v24  ;;  %v460_v42 = vld [vmem:[%s375_s28 + $0x8] sm:$0xf] }
  0x4d   : > { %v762_v7 = vrot.slane %v760_v57, 4  ;;  %4007 = vmatmul.mubr.msk.bf16.vlgmr.msra.gmra.mrb[0].mxu1 %vm529_vm2, %v3666_v60  ;;  %v768_v10 = vrot.slane %v766_v62, 5  ;;  %v774_v14 = vshll.u32 %v680_v49, 16  ;;  %v780_v15 = vshll.u32 %v681_v59, 16  ;;  %462 = vst.msk [vmem:[#allocation2 + $0x60] sm:$0xf] %vm433_vm1, %v458_v36 }
  0x4e   : > { %v773_v13 = vrot.slane %v771_v63, 4  ;;  %v753_v17 = vor.u32 %v752_v2, %v749_v53  ;;  %v784_v19 = vshrl.u32 %v681_v59, 16  ;;  %v790_v20 = vshll.u32 %v682_v58, 16  ;;  %4023 = vmatpush3.bf16.msra.mxu1 %v4519_v11  ;;  %463 = vst.msk [vmem:[#allocation2 + $0x64] sm:$0xf] %vm433_vm1, %v459_v37 }
  0x4f   : > { %v763_v18 = vor.u32 %v762_v7, %v758_v5  ;;  %v776_v24 = vrot.slane %v774_v14, 5  ;;  %v782_v23 = vrot.slane %v780_v15, 5  ;;  %v3744_v25 = vrot.slane %v2050_v0, 9  ;;  %4281 = vmatprep.subr.msk.bf16.mxu1 %vm554_vm0, %v4568_v31  ;;  %v684_v49 = vld [vmem:[#allocation2 + $0x34] sm:$0xf] }
  0x50   : > { %v2116_v26 = vrot.slane %v2051_v8, 5  ;;  %v754_v9 = vrot.slane %v753_v17, 4  ;;  %v786_v29 = vrot.slane %v784_v19, 4  ;;  %v792_v30 = vrot.slane %v790_v20, 5  ;;  %v685_v50 = vld [vmem:[#allocation2 + $0x38] sm:$0x1] }
  0x51   : > { %v764_v28 = vrot.slane %v763_v18, 4  ;;  %v777_v11 = vor.u32 %v776_v24, %v773_v13  ;;  %v2119_v6 = vrot.slane %v2052_v16, 5  ;;  %v3745_v41 = vrot.slane %v2053_v21, 9  ;;  %464 = vst.msk [vmem:[#allocation2 + $0x68] sm:$0xf] %vm433_vm1, %v460_v42 }
  0x52   : > { %v2117_v33 = vsel %vm4636_vm8, %v3744_v25, %v2116_v26  ;;  %v2118_v34 = vrot.slane %v2116_v26, 4  ;;  %4083 = vmatmul.mubr.msk.bf16.gmra.mrb[4].mxu0 %vm529_vm2, %v3752_v1  ;;  %v759_v38 = vsel %vm4617_vm7, %v754_v9, %v758_v5  ;;  %v787_v39 = vor.u32 %v786_v29, %v782_v23  ;;  %v686_v55 = vld [vmem:[#allocation2 + $0x3c] sm:$0xf]  ;;  %v687_v61 = vld [vmem:[#allocation2 + $0x40] sm:$0xf] }
  0x53   : > { %v769_v31 = vsel %vm4617_vm7, %v764_v28, %v768_v10  ;;  %v778_v46 = vrot.slane %v777_v11, 4  ;;  %v2123_v48 = vrot.slane %v2054_v22, 5  ;;  %v2126_v53 = vrot.slane %v2055_v27, 5  ;;  %v688_v62 = vld [vmem:[#allocation2 + $0x44] sm:$0x1] }
  0x54   : > { %v3667_v45 = vcombine.low %v759_v38, %v769_v31  ;;  %v2120_v47 = vsel %vm4636_vm8, %v2118_v34, %v2119_v6  ;;  %v788_v51 = vrot.slane %v787_v39, 4  ;;  %v795_v54 = vshrl.u32 %v683_v32, 16  ;;  %v2056_v2 = vld [vmem:[#allocation2 + $0x54] sm:$0xe]  ;;  %v2057_v13 = vld [vmem:[#allocation2 + $0x58] sm:$0xf] }
  0x55   : > { %v3753_v52 = vcombine.low %v2117_v33, %v2120_v47  ;;  %v783_v56 = vsel %vm4617_vm7, %v778_v46, %v782_v23  ;;  %v2124_v57 = vsel %vm4636_vm8, %v3745_v41, %v2123_v48  ;;  %v2125_v59 = vrot.slane %v2123_v48, 4  ;;  %v2058_v22 = vld [vmem:[#allocation2 + $0x5c] sm:$0x1]  ;;  %v2059_v27 = vld [vmem:[#allocation2 + $0x60] sm:$0xe] }
  0x56   : > { %4010 = vmatprep.mubr.msk.bf16.mxu1 %vm529_vm2, %v3667_v45  ;;  %v798_v60 = vshll.u32 %v683_v32, 16  ;;  %v793_v58 = vsel %vm4617_vm7, %v788_v51, %v792_v30  ;;  %v797_v63 = vrot.slane %v795_v54, 4  ;;  %v804_v0 = vshll.u32 %v684_v49, 16  ;;  %v2060_v32 = vld [vmem:[#allocation2 + $0x64] sm:$0xf] }
  0x57   : > { %4086 = vmatprep.mubr.msk.bf16.mxu0 %vm529_vm2, %v3753_v52  ;;  %v808_v1 = vshrl.u32 %v684_v49, 16  ;;  %v3668_v5 = vcombine.low %v783_v56, %v793_v58  ;;  %v2127_v7 = vsel %vm4636_vm8, %v2125_v59, %v2126_v53  ;;  %v814_v10 = vshll.u32 %v685_v50, 16  ;;  %v689_v41 = vld [vmem:[#allocation2 + $0x48] sm:$0xf]  ;;  %v690_v48 = vld [vmem:[#allocation2 + $0x4c] sm:$0xf] }
  0x58   : > { %v800_v8 = vrot.slane %v798_v60, 5  ;;  %v3754_v14 = vcombine.low %v2124_v57, %v2127_v7  ;;  %v806_v15 = vrot.slane %v804_v0, 5  ;;  %v819_v17 = vshrl.u32 %v686_v55, 16  ;;  %v2061_v36 = vld [vmem:[#allocation2 + $0x68] sm:$0x1] }
  0x59   : > { %v810_v16 = vrot.slane %v808_v1, 4  ;;  %4011 = vmatmul.mubr.msk.bf16.gmra.mrb[4].mxu1 %vm529_vm2, %v3668_v5  ;;  %v816_v19 = vrot.slane %v814_v10, 5  ;;  %v822_v20 = vshll.u32 %v686_v55, 16  ;;  %v828_v21 = vshll.u32 %v687_v61, 16  ;;  %v691_v49 = vld [vmem:[#allocation2 + $0x50] sm:$0x1] }
  0x5a   : > { %v801_v18 = vor.u32 %v800_v8, %v797_v63  ;;  %4087 = vmatmul.mubr.msk.bf16.gmra.mrb[8].mxu0 %vm529_vm2, %v3754_v14  ;;  %v821_v23 = vrot.slane %v819_v17, 4  ;;  %v832_v25 = vshrl.u32 %v687_v61, 16  ;;  %v838_v26 = vshll.u32 %v688_v62, 16  ;;  %v692_v54 = vld [vmem:[#allocation2 + $0x54] sm:$0xf]  ;;  %v4340_v8 = vld [vmem:[#allocation2 + $0x18] sm:$0xff]  }
  0x5b   : > { %v811_v24 = vor.u32 %v810_v16, %v806_v15  ;;  %v824_v28 = vrot.slane %v822_v20, 5  ;;  %v830_v29 = vrot.slane %v828_v21, 5  ;;  %v3746_v30 = vrot.slane %v2056_v2, 9  ;;  %v693_v60 = vld [vmem:[#allocation2 + $0x58] sm:$0xf] }
  0x5c   : > { %v802_v9 = vrot.slane %v801_v18, 4  ;;  %v834_v33 = vrot.slane %v832_v25, 4  ;;  %v840_v34 = vrot.slane %v838_v26, 5  ;;  %v2130_v6 = vrot.slane %v2057_v13, 5  ;;  %v694_v0 = vld [vmem:[#allocation2 + $0x5c] sm:$0x1] }
  0x5d   : > { %v812_v11 = vrot.slane %v811_v24, 4  ;;  %v825_v38 = vor.u32 %v824_v28, %v821_v23  ;;  %v2133_v31 = vrot.slane %v2058_v22, 5  ;;  %v3747_v39 = vrot.slane %v2059_v27, 9  ;;  %v1088_v16 = vld [vmem:[#allocation2] sm:$0xe] }
  0x5e   : > { %v807_v37 = vsel %vm4617_vm7, %v802_v9, %v806_v15  ;;  %v835_v45 = vor.u32 %v834_v33, %v830_v29  ;;  %v2131_v46 = vsel %vm4636_vm8, %v3746_v30, %v2130_v6  ;;  %v2132_v47 = vrot.slane %v2130_v6, 4  ;;  %v1089_v17 = vld [vmem:[#allocation2 + $0x4] sm:$0xf]  ;;  %v1090_v22 = vld [vmem:[#allocation2 + $0x8] sm:$0x1] }
  0x5f   : > { %v817_v42 = vsel %vm4617_vm7, %v812_v11, %v816_v19  ;;  %v826_v51 = vrot.slane %v825_v38, 4  ;;  %v2137_v52 = vrot.slane %v2060_v32, 5  ;;  %v2140_v53 = vrot.slane %v2061_v36, 5  ;;  %v1091_v24 = vld [vmem:[#allocation2 + $0xc] sm:$0xe] }
  0x60   : > { %v3669_v50 = vcombine.low %v807_v37, %v817_v42  ;;  %v836_v55 = vrot.slane %v835_v45, 4  ;;  %v2134_v56 = vsel %vm4636_vm8, %v2132_v47, %v2133_v31  ;;  %v843_v57 = vshrl.u32 %v689_v41, 16  ;;  %v1092_v9 = vld [vmem:[#allocation2 + $0x10] sm:$0xf]  ;;  %v1093_v11 = vld [vmem:[#allocation2 + $0x14] sm:$0x1] }
  0x61   : > { %v846_v59 = vshll.u32 %v689_v41, 16  ;;  %v831_v61 = vsel %vm4617_vm7, %v826_v51, %v830_v29  ;;  %v3755_v62 = vcombine.low %v2131_v46, %v2134_v56  ;;  %v2138_v58 = vsel %vm4636_vm8, %v3747_v39, %v2137_v52  ;;  %v1094_v33 = vld [vmem:[#allocation2 + $0x18] sm:$0xe]  ;;  %v4341_v41 = vld [vmem:[#allocation2 + $0x24] sm:$0xff]   ;;  %v1095_v45 = vld [vmem:[#allocation2 + $0x1c] sm:$0xf] }
  0x62   : > { %4014 = vmatprep.mubr.msk.bf16.mxu1 %vm529_vm2, %v3669_v50  ;;  %v2139_v63 = vrot.slane %v2137_v52, 4  ;;  %v841_v1 = vsel %vm4617_vm7, %v836_v55, %v840_v34  ;;  %v845_v2 = vrot.slane %v843_v57, 4  ;;  %v852_v7 = vshll.u32 %v690_v48, 16  ;;  %v1096_v50 = vld [vmem:[#allocation2 + $0x20] sm:$0x1] }
  0x63   : > { %v848_v5 = vrot.slane %v846_v59, 5  ;;  %v3670_v10 = vcombine.low %v831_v61, %v841_v1  ;;  %4090 = vmatprep.mubr.msk.bf16.mxu0 %vm529_vm2, %v3755_v62  ;;  %v856_v14 = vshrl.u32 %v690_v48, 16  ;;  %v862_v15 = vshll.u32 %v691_v49, 16  ;;  %v1097_v51 = vld [vmem:[#allocation2 + $0x24] sm:$0xe]  ;;  %v4342_v61 = vld [vmem:[#allocation2 + $0x30] sm:$0xff]  }
  0x64   : > { %v2141_v13 = vsel %vm4636_vm8, %v2139_v63, %v2140_v53  ;;  %v854_v20 = vrot.slane %v852_v7, 5  ;;  %v867_v21 = vshrl.u32 %v692_v54, 16  ;;  %v870_v26 = vshll.u32 %v692_v54, 16  ;;  %v1098_v56 = vld [vmem:[#allocation2 + $0x28] sm:$0xf] }
  0x65   : > { %v3756_v18 = vcombine.low %v2138_v58, %v2141_v13  ;;  %v849_v19 = vor.u32 %v848_v5, %v845_v2  ;;  %4015 = vmatmul.mubr.msk.bf16.gmra.mrb[8].mxu1 %vm529_vm2, %v3670_v10  ;;  %v858_v23 = vrot.slane %v856_v14, 4  ;;  %v864_v25 = vrot.slane %v862_v15, 5  ;;  %v1099_v58 = vld [vmem:[#allocation2 + $0x2c] sm:$0x1]  ;;  %v1100_v5 = vld [vmem:[#allocation2 + $0x30] sm:$0xe] }
  0x66   : > { %v876_v27 = vshll.u32 %v693_v60, 16  ;;  %v869_v29 = vrot.slane %v867_v21, 4  ;;  %v880_v30 = vshrl.u32 %v693_v60, 16  ;;  %v886_v32 = vshll.u32 %v694_v0, 16  ;;  %v1101_v7 = vld [vmem:[#allocation2 + $0x34] sm:$0xf] }
  0x67   : > { %4091 = vmatmul.mubr.msk.bf16.gmra.mrb[12].mxu0 %vm529_vm2, %v3756_v18  ;;  %v850_v28 = vrot.slane %v849_v19, 4  ;;  %v859_v34 = vor.u32 %v858_v23, %v854_v20  ;;  %v872_v6 = vrot.slane %v870_v26, 5  ;;  %v3681_v37 = vrot.slane %v1088_v16, 9  ;;  %v1103_v16 = vld [vmem:[#allocation2 + $0x3c] sm:$0xe] }
  0x68   : > { %v878_v36 = vrot.slane %v876_v27, 5  ;;  %4096 = vmatprep.mubr.msk.bf16.mxu0 %vm529_vm2, %v4340_v8  ;;  %v882_v31 = vrot.slane %v880_v30, 4  ;;  %v888_v39 = vrot.slane %v886_v32, 5  ;;  %v1141_v42 = vrot.slane %v1089_v17, 5  ;;  %v1102_v8 = vld [vmem:[#allocation2 + $0x38] sm:$0x1] }
  0x69   : > { %v855_v38 = vsel %vm4617_vm7, %v850_v28, %v854_v20  ;;  %v860_v46 = vrot.slane %v859_v34, 4  ;;  %v873_v47 = vor.u32 %v872_v6, %v869_v29  ;;  %v1144_v48 = vrot.slane %v1090_v22, 5  ;;  %v1104_v17 = vld [vmem:[#allocation2 + $0x40] sm:$0xf]  ;;  %v1105_v22 = vld [vmem:[#allocation2 + $0x44] sm:$0x1] }
  0x6a   : > { %v3682_v49 = vrot.slane %v1091_v24, 9  ;;  %v883_v52 = vor.u32 %v882_v31, %v878_v36  ;;  %v1142_v53 = vsel %vm4636_vm8, %v3681_v37, %v1141_v42  ;;  %v1143_v54 = vrot.slane %v1141_v42, 4  ;;  %v465_v27 = vld [vmem:[%s388_s7] sm:$0xf]  ;;  %v466_v32 = vld [vmem:[%s388_s7 + $0x4] sm:$0xf] }
  0x6b   : > { %v1148_v55 = vrot.slane %v1092_v9, 5  ;;  %v865_v57 = vsel %vm4617_vm7, %v860_v46, %v864_v25  ;;  %v874_v59 = vrot.slane %v873_v47, 4  ;;  %v1151_v60 = vrot.slane %v1093_v11, 5  ;;  %v4343_v28 = vld [vmem:[#allocation2 + $0x3c] sm:$0xff]   ;;  %469 = vst.msk [vmem:[#allocation2 + $0x6c] sm:$0xf] %vm433_vm1, %v465_v27 }
  0x6c   : > { %v3683_v62 = vrot.slane %v1094_v33, 9  ;;  %v3671_v63 = vcombine.low %v855_v38, %v865_v57  ;;  %v884_v0 = vrot.slane %v883_v52, 4  ;;  %v1145_v1 = vsel %vm4636_vm8, %v1143_v54, %v1144_v48  ;;  %v4344_v33 = vld [vmem:[#allocation2 + $0x48] sm:$0xff]   ;;  %470 = vst.msk [vmem:[#allocation2 + $0x70] sm:$0xf] %vm433_vm1, %v466_v32 }
  0x6d   : > { %v4770_v2 = vsel %vm4636_vm8, %v3682_v49, %v1148_v55  ;;  %v879_v10 = vsel %vm4617_vm7, %v874_v59, %v878_v36  ;;  %v3690_v13 = vcombine.low %v1142_v53, %v1145_v1  ;;  %v1150_v14 = vrot.slane %v1148_v55, 4  ;;  %v1106_v37 = vld [vmem:[#allocation2 + $0x48] sm:$0xe]  ;;  %v1108_v42 = vld [vmem:[#allocation2 + $0x50] sm:$0x1] }
  0x6e   : > { %v1155_v15 = vrot.slane %v1095_v45, 5  ;;  %4018 = vmatprep.mubr.msk.bf16.mxu1 %vm529_vm2, %v3671_v63  ;;  %v889_v18 = vsel %vm4617_vm7, %v884_v0, %v888_v39  ;;  %v1158_v19 = vrot.slane %v1096_v50, 5  ;;  %v3684_v20 = vrot.slane %v1097_v51, 9  ;;  %v1109_v49 = vld [vmem:[#allocation2 + $0x54] sm:$0xe] }
  0x6f   : > { %4097 = vmatmul.mubr.msk.bf16.vlgmr.msra.gmra.mrb[0].mxu0 %vm529_vm2, %v4341_v41  ;;  %v1162_v21 = vrot.slane %v1098_v56, 5  ;;  %v3672_v24 = vcombine.low %v879_v10, %v889_v18  ;;  %v4784_v23 = vsel %vm4636_vm8, %v1150_v14, %v1151_v60  ;;  %v1165_v30 = vrot.slane %v1099_v58, 5  ;;  %v1107_v41 = vld [vmem:[#allocation2 + $0x4c] sm:$0xf]  ;;  %v1110_v50 = vld [vmem:[#allocation2 + $0x58] sm:$0xf] }
  0x70   : > { %4113 = vmatpush3.bf16.msra.mxu0 %v4592_v40  ;;  %4100 = vmatprep.mubr.msk.bf16.mxu0 %vm529_vm2, %v4342_v61  ;;  %v4789_v25 = vsel %vm4636_vm8, %v3683_v62, %v1155_v15  ;;  %v1157_v26 = vrot.slane %v1155_v15, 4  ;;  %v3691_v9 = vcombine.low %v4770_v2, %v4784_v23  ;;  %v467_v40 = vld [vmem:[%s388_s7 + $0x8] sm:$0xf]  ;;  %v3685_v34 = vrot.slane %v1100_v5, 9  ;;  %v1111_v55 = vld [vmem:[#allocation2 + $0x5c] sm:$0x1] }
  0x71   : > { %v1164_v29 = vrot.slane %v1162_v21, 4  ;;  %4287 = vmatprep.subr.msk.bf16.mxu0 %vm554_vm0, %v4579_v35  ;;  %4019 = vmatmul.mubr.msk.bf16.gmra.mrb[12].mxu1 %vm529_vm2, %v3672_v24  ;;  %v1169_v6 = vrot.slane %v1101_v7, 5  ;;  %v1172_v36 = vrot.slane %v1102_v8, 5  ;;  %471 = vst.msk [vmem:[#allocation2 + $0x74] sm:$0xf] %vm433_vm1, %v467_v40  ;;  %v4805_v35 = vsel %vm4636_vm8, %v3684_v20, %v1162_v21  ;;  %v4345_v14 = vld [vmem:[#allocation2 + $0x54] sm:$0xff]  }
  0x72   : > { %v1159_v11 = vsel %vm4636_vm8, %v1157_v26, %v1158_v19  ;;  %4024 = vmatprep.mubr.msk.bf16.mxu1 %vm529_vm2, %v3690_v13  ;;  %v3686_v31 = vrot.slane %v1103_v16, 9  ;;  %v1176_v39 = vrot.slane %v1104_v17, 5  ;;  %v1179_v48 = vrot.slane %v1105_v22, 5  ;;  %v2571_v61 = vld [vmem:[#allocation2 + $0x18] sm:$0xf] }
  0x73   : > { %v3692_v38 = vcombine.low %v4789_v25, %v1159_v11  ;;  %v4809_v45 = vsel %vm4636_vm8, %v1164_v29, %v1165_v30  ;;  %v4813_v46 = vsel %vm4636_vm8, %v3685_v34, %v1169_v6  ;;  %v1171_v47 = vrot.slane %v1169_v6, 4  ;;  %v2572_v1 = vld [vmem:[#allocation2 + $0x1c] sm:$0xf]  ;;  %v2573_v2 = vld [vmem:[#allocation2 + $0x20] sm:$0x1] }
  0x74   : > { %v4817_v51 = vsel %vm4636_vm8, %v3686_v31, %v1176_v39  ;;  %v1178_v52 = vrot.slane %v1176_v39, 4  ;;  %v3687_v53 = vrot.slane %v1106_v37, 9  ;;  %v1183_v54 = vrot.slane %v1107_v41, 5  ;;  %v2574_v13 = vld [vmem:[#allocation2 + $0x24] sm:$0xf] }
  0x75   : > { %v4821_v56 = vsel %vm4636_vm8, %v1171_v47, %v1172_v36  ;;  %v1186_v57 = vrot.slane %v1108_v42, 5  ;;  %v3688_v59 = vrot.slane %v1109_v49, 9  ;;  %v1190_v60 = vrot.slane %v1110_v50, 5  ;;  %v2575_v24 = vld [vmem:[#allocation2 + $0x28] sm:$0xf]  ;;  %v4346_v25 = vld [vmem:[#allocation2 + $0x60] sm:$0xff]  }
  0x76   : > { %v3693_v62 = vcombine.low %v4805_v35, %v4809_v45  ;;  %v4828_v58 = vsel %vm4636_vm8, %v1178_v52, %v1179_v48  ;;  %v4832_v63 = vsel %vm4636_vm8, %v3687_v53, %v1183_v54  ;;  %v1185_v0 = vrot.slane %v1183_v54, 4  ;;  %v2576_v23 = vld [vmem:[#allocation2 + $0x2c] sm:$0x1]  ;;  %v4356_v11 = vld [vmem:[%s5057_s3 + $0x10] sm:$0xf] }
  0x77   : > { %4101 = vmatmul.mubr.msk.bf16.gmra.mrb[4].mxu0 %vm529_vm2, %v4343_v28  ;;  %v3694_v5 = vcombine.low %v4813_v46, %v4821_v56  ;;  %v3695_v7 = vcombine.low %v4817_v51, %v4828_v58  ;;  %v1192_v8 = vrot.slane %v1190_v60, 4  ;;  %v1193_v10 = vrot.slane %v1111_v55, 5  ;;  %v2577_v39 = vld [vmem:[#allocation2 + $0x30] sm:$0xf]  ;;  %v2578_v48 = vld [vmem:[#allocation2 + $0x34] sm:$0xf] }
  0x78   : > { %4104 = vmatprep.mubr.msk.bf16.mxu0 %vm529_vm2, %v4344_v33  ;;  %v4841_v15 = vsel %vm4636_vm8, %v1185_v0, %v1186_v57  ;;  %v2596_v16 = vshrl.u32 %v2571_v61, 16  ;;  %v2599_v17 = vshll.u32 %v2571_v61, 16  ;;  %v2605_v18 = vshll.u32 %v2572_v1, 16  ;;  %v2579_v56 = vld [vmem:[#allocation2 + $0x38] sm:$0x1] }
  0x79   : > { %4025 = vmatmul.mubr.msk.bf16.vlgmr.msra.gmra.mrb[0].mxu1 %vm529_vm2, %v3691_v9  ;;  %v3696_v19 = vcombine.low %v4832_v63, %v4841_v15  ;;  %v4848_v20 = vsel %vm4636_vm8, %v3688_v59, %v1190_v60  ;;  %v2609_v21 = vshrl.u32 %v2572_v1, 16  ;;  %v2615_v22 = vshll.u32 %v2573_v2, 16  ;;  %v2580_v60 = vld [vmem:[#allocation2 + $0x3c] sm:$0xf] }
  0x7a   : > { %4028 = vmatprep.mubr.msk.bf16.mxu1 %vm529_vm2, %v3692_v38  ;;  %4041 = vmatpush3.bf16.msra.mxu1 %v4601_v43  ;;  %v4854_v26 = vsel %vm4636_vm8, %v1192_v8, %v1193_v10  ;;  %v2598_v27 = vrot.slane %v2596_v16, 4  ;;  %v2601_v9 = vrot.slane %v2599_v17, 5  ;;  %v2607_v28 = vrot.slane %v2605_v18, 5  ;;  %v2581_v8 = vld [vmem:[#allocation2 + $0x40] sm:$0xf]  ;;  %v4347_v10 = vld [vmem:[#allocation2 + $0x6c] sm:$0xff]  }
  0x7b   : > { %v2611_v29 = vrot.slane %v2609_v21, 4  ;;  %v2617_v30 = vrot.slane %v2615_v22, 5  ;;  %v2620_v32 = vshrl.u32 %v2574_v13, 16  ;;  %v2623_v40 = vshll.u32 %v2574_v13, 16  ;;  %4283 = vmatprep.subr.msk.bf16.mxu1 %vm554_vm0, %v4356_v11  ;;  %v2582_v18 = vld [vmem:[#allocation2 + $0x44] sm:$0x1] }
  0x7c   : > { %v2602_v33 = vor.u32 %v2601_v9, %v2598_v27  ;;  %v2629_v43 = vshll.u32 %v2575_v24, 16  ;;  %v2633_v34 = vshrl.u32 %v2575_v24, 16  ;;  %v2639_v6 = vshll.u32 %v2576_v23, 16  ;;  %v2583_v27 = vld [vmem:[#allocation2 + $0x48] sm:$0xf] }
  0x7d   : > { %v3697_v36 = vcombine.low %v4848_v20, %v4854_v26  ;;  %v2612_v37 = vor.u32 %v2611_v29, %v2607_v28  ;;  %v2622_v38 = vrot.slane %v2620_v32, 4  ;;  %v2625_v31 = vrot.slane %v2623_v40, 5  ;;  %v2594_v20 = vld [vmem:[#allocation2 + $0x74] sm:$0x1] }
  0x7e   : > { %v2603_v41 = vrot.slane %v2602_v33, 4  ;;  %v2631_v42 = vrot.slane %v2629_v43, 5  ;;  %v2635_v46 = vrot.slane %v2633_v34, 4  ;;  %v2641_v47 = vrot.slane %v2639_v6, 5  ;;  %v2585_v6 = vld [vmem:[#allocation2 + $0x50] sm:$0x1] }
  0x7f   : > { %4105 = vmatmul.mubr.msk.bf16.gmra.mrb[8].mxu0 %vm529_vm2, %v4345_v14  ;;  %v2613_v49 = vrot.slane %v2612_v37, 4  ;;  %v2626_v50 = vor.u32 %v2625_v31, %v2622_v38  ;;  %v2644_v52 = vshrl.u32 %v2577_v39, 16  ;;  %v2647_v53 = vshll.u32 %v2577_v39, 16 }
  0x80   : > { %4108 = vmatprep.mubr.msk.bf16.mxu0 %vm529_vm2, %v4346_v25  ;;  %v2608_v54 = vsel %vm4617_vm7, %v2603_v41, %v2607_v28  ;;  %v2636_v55 = vor.u32 %v2635_v46, %v2631_v42  ;;  %v2653_v57 = vshll.u32 %v2578_v48, 16  ;;  %v2657_v59 = vshrl.u32 %v2578_v48, 16  ;;  %v2586_v46 = vld [vmem:[#allocation2 + $0x54] sm:$0xf] }
  0x81   : > { %4029 = vmatmul.mubr.msk.bf16.gmra.mrb[4].mxu1 %vm529_vm2, %v3693_v62  ;;  %v2618_v61 = vsel %vm4617_vm7, %v2613_v49, %v2617_v30  ;;  %v2627_v0 = vrot.slane %v2626_v50, 4  ;;  %v2646_v1 = vrot.slane %v2644_v52, 4  ;;  %v2649_v2 = vrot.slane %v2647_v53, 5  ;;  %v2584_v30 = vld [vmem:[#allocation2 + $0x4c] sm:$0xf] }
  0x82   : > { %4032 = vmatprep.mubr.msk.bf16.mxu1 %vm529_vm2, %v3694_v5  ;;  %v3783_v13 = vcombine.low %v2608_v54, %v2618_v61  ;;  %v2637_v14 = vrot.slane %v2636_v55, 4  ;;  %v2655_v16 = vrot.slane %v2653_v57, 5  ;;  %v2659_v17 = vrot.slane %v2657_v59, 4  ;;  %v2588_v57 = vld [vmem:[#allocation2 + $0x5c] sm:$0x1] }
  0x83   : > { %v2632_v35 = vsel %vm4617_vm7, %v2627_v0, %v2631_v42  ;;  %v2650_v45 = vor.u32 %v2649_v2, %v2646_v1  ;;  %v2663_v62 = vshll.u32 %v2579_v56, 16  ;;  %v2668_v21 = vshrl.u32 %v2580_v60, 16 }
  0x84   : > { %v2642_v22 = vsel %vm4617_vm7, %v2637_v14, %v2641_v47  ;;  %v2660_v24 = vor.u32 %v2659_v17, %v2655_v16  ;;  %v2671_v23 = vshll.u32 %v2580_v60, 16  ;;  %v2677_v25 = vshll.u32 %v2581_v8, 16  ;;  %v2587_v47 = vld [vmem:[#allocation2 + $0x58] sm:$0xf] }
  0x85   : > { %v3784_v5 = vcombine.low %v2632_v35, %v2642_v22  ;;  %v2651_v9 = vrot.slane %v2650_v45, 4  ;;  %v2665_v28 = vrot.slane %v2663_v62, 5  ;;  %v2670_v29 = vrot.slane %v2668_v21, 4  ;;  %v2591_v21 = vld [vmem:[#allocation2 + $0x68] sm:$0x1] }
  0x86   : > { %v2661_v32 = vrot.slane %v2660_v24, 4  ;;  %v2673_v40 = vrot.slane %v2671_v23, 5  ;;  %v2679_v11 = vrot.slane %v2677_v25, 5  ;;  %v2681_v33 = vshrl.u32 %v2581_v8, 16  ;;  %v2592_v22 = vld [vmem:[#allocation2 + $0x6c] sm:$0xf] }
  0x87   : > { %4109 = vmatmul.mubr.msk.bf16.gmra.mrb[12].mxu0 %vm529_vm2, %v4347_v10  ;;  %v2656_v43 = vsel %vm4617_vm7, %v2651_v9, %v2655_v16  ;;  %v2687_v34 = vshll.u32 %v2582_v18, 16  ;;  %v2692_v37 = vshrl.u32 %v2583_v27, 16  ;;  %v2695_v38 = vshll.u32 %v2583_v27, 16  ;;  %v4348_v10 = vld [vmem:[#allocation2 + $0xc] sm:$0xff]   ;;  %v2590_v18 = vld [vmem:[#allocation2 + $0x64] sm:$0xf] }
  0x88   : > { %4114 = vmatprep.mubr.msk.bf16.mxu0 %vm529_vm2, %v3783_v13  ;;  %v2666_v31 = vsel %vm4617_vm7, %v2661_v32, %v2665_v28  ;;  %v2674_v39 = vor.u32 %v2673_v40, %v2670_v29  ;;  %v2683_v41 = vrot.slane %v2681_v33, 4  ;;  %v2701_v42 = vshll.u32 %v2584_v30, 16 }
  0x89   : > { %4033 = vmatmul.mubr.msk.bf16.gmra.mrb[8].mxu1 %vm529_vm2, %v3695_v7  ;;  %v3785_v48 = vcombine.low %v2656_v43, %v2666_v31  ;;  %v2689_v49 = vrot.slane %v2687_v34, 5  ;;  %v2694_v50 = vrot.slane %v2692_v37, 4  ;;  %v2697_v52 = vrot.slane %v2695_v38, 5  ;;  %v2985_v31 = vld [vmem:[#allocation2 + $0x18] sm:$0xe] }
  0x8a   : > { %4036 = vmatprep.mubr.msk.bf16.mxu1 %vm529_vm2, %v3696_v19  ;;  %v2675_v53 = vrot.slane %v2674_v39, 4  ;;  %v2684_v54 = vor.u32 %v2683_v41, %v2679_v11  ;;  %v2703_v55 = vrot.slane %v2701_v42, 5  ;;  %v2705_v56 = vshrl.u32 %v2584_v30, 16  ;;  %v2589_v19 = vld [vmem:[#allocation2 + $0x60] sm:$0xf]  ;;  %v4349_v39 = vld [vmem:[#allocation2 + $0x18] sm:$0xff]  }
  0x8b   : > { %v2698_v59 = vor.u32 %v2697_v52, %v2694_v50  ;;  %v2711_v60 = vshll.u32 %v2585_v6, 16  ;;  %v2716_v61 = vshrl.u32 %v2586_v46, 16  ;;  %v2719_v51 = vshll.u32 %v2586_v46, 16 }
  0x8c   : > { %v2680_v58 = vsel %vm4617_vm7, %v2675_v53, %v2679_v11  ;;  %v2685_v7 = vrot.slane %v2684_v54, 4  ;;  %v2707_v0 = vrot.slane %v2705_v56, 4  ;;  %v2725_v1 = vshll.u32 %v2587_v47, 16 }
  0x8d   : > { %v2699_v2 = vrot.slane %v2698_v59, 4  ;;  %v2713_v8 = vrot.slane %v2711_v60, 5  ;;  %v2718_v63 = vrot.slane %v2716_v61, 4  ;;  %v2721_v15 = vrot.slane %v2719_v51, 5 }
  0x8e   : > { %v2690_v13 = vsel %vm4617_vm7, %v2685_v7, %v2689_v49  ;;  %v2708_v14 = vor.u32 %v2707_v0, %v2703_v55  ;;  %v4896_v16 = vrot.slane %v2725_v1, 5  ;;  %v2729_v17 = vshrl.u32 %v2587_v47, 16  ;;  %v4350_v49 = vld [vmem:[#allocation2 + $0x24] sm:$0xff]  }
  0x8f   : > { %4115 = vmatmul.mubr.msk.bf16.vlgmr.msra.gmra.mrb[0].mxu0 %vm529_vm2, %v3784_v5  ;;  %v2704_v35 = vsel %vm4617_vm7, %v2699_v2, %v2703_v55  ;;  %v2722_v45 = vor.u32 %v2721_v15, %v2718_v63  ;;  %v2735_v62 = vshll.u32 %v2588_v57, 16  ;;  %v2740_v25 = vshrl.u32 %v2589_v19, 16  ;;  %v2593_v5 = vld [vmem:[#allocation2 + $0x70] sm:$0xf]  ;;  %v2987_v55 = vld [vmem:[#allocation2 + $0x20] sm:$0x1] }
  0x90   : > { %4131 = vmatpush3.bf16.msra.mxu0 %v4606_v44  ;;  %4118 = vmatprep.mubr.msk.bf16.mxu0 %vm529_vm2, %v3785_v48  ;;  %v2709_v24 = vrot.slane %v2708_v14, 4  ;;  %v2731_v23 = vrot.slane %v2729_v17, 4  ;;  %v2743_v27 = vshll.u32 %v2589_v19, 16  ;;  %v3786_v44 = vcombine.low %v2680_v58, %v2690_v13  ;;  %v2986_v48 = vld [vmem:[#allocation2 + $0x1c] sm:$0xf] }
  0x91   : > { %4037 = vmatmul.mubr.msk.bf16.gmra.mrb[12].mxu1 %vm529_vm2, %v3697_v36  ;;  %v2723_v9 = vrot.slane %v2722_v45, 4  ;;  %v2749_v28 = vshll.u32 %v2590_v18, 16  ;;  %v2753_v29 = vshrl.u32 %v2590_v18, 16  ;;  %v2742_v40 = vrot.slane %v2740_v25, 4  ;;  %v4919_v0 = vld [vmem:[#allocation2 + $0x28] sm:$0xf] }
  0x92   : > { %4042 = vmatprep.mubr.msk.bf16.mxu1 %vm529_vm2, %v4348_v10  ;;  %v2714_v30 = vsel %vm4617_vm7, %v2709_v24, %v2713_v8  ;;  %v2732_v32 = vor.u32 %v2731_v23, %v4896_v16  ;;  %v2745_v11 = vrot.slane %v2743_v27, 5  ;;  %v2737_v43 = vrot.slane %v2735_v62, 5  ;;  %v1636_v15 = vld [vmem:[#allocation2 + $0x3c] sm:$0xf]  ;;  %v2988_v14 = vld [vmem:[#allocation2 + $0x24] sm:$0xe] }
  0x93   : > { %v3787_v33 = vcombine.low %v2704_v35, %v2714_v30  ;;  %v2751_v34 = vrot.slane %v2749_v28, 5  ;;  %v2755_v6 = vrot.slane %v2753_v29, 4  ;;  %v2759_v37 = vshll.u32 %v2591_v21, 16  ;;  %v2990_v35 = vld [vmem:[#allocation2 + $0x2c] sm:$0x1]  ;;  %v4351_v25 = vld [vmem:[#allocation2 + $0x30] sm:$0xff]  }
  0x94   : > { %v2733_v26 = vrot.slane %v2732_v32, 4  ;;  %v2746_v36 = vor.u32 %v2745_v11, %v2742_v40  ;;  %v2764_v38 = vshrl.u32 %v2592_v22, 16  ;;  %v2767_v42 = vshll.u32 %v2592_v22, 16  ;;  %v1637_v22 = vld [vmem:[#allocation2 + $0x40] sm:$0xf] }
  0x95   : > { %v2756_v41 = vor.u32 %v2755_v6, %v2751_v34  ;;  %v2773_v46 = vshll.u32 %v2593_v5, 16  ;;  %v2777_v47 = vshrl.u32 %v2593_v5, 16  ;;  %v2728_v50 = vsel %vm4617_vm7, %v2723_v9, %v4896_v16  ;;  %v1639_v9 = vld [vmem:[#allocation2 + $0x48] sm:$0xf]  ;;  %v4352_v28 = vld [vmem:[#allocation2 + $0x3c] sm:$0xff]  }
  0x96   : > { %v2747_v52 = vrot.slane %v2746_v36, 4  ;;  %v2761_v53 = vrot.slane %v2759_v37, 5  ;;  %v2766_v54 = vrot.slane %v2764_v38, 4  ;;  %v2738_v56 = vsel %vm4617_vm7, %v2733_v26, %v2737_v43  ;;  %v1640_v11 = vld [vmem:[#allocation2 + $0x4c] sm:$0xf] }
  0x97   : > { %4119 = vmatmul.mubr.msk.bf16.gmra.mrb[4].mxu0 %vm529_vm2, %v3786_v44  ;;  %v2757_v57 = vrot.slane %v2756_v41, 4  ;;  %v2769_v59 = vrot.slane %v2767_v42, 5  ;;  %v2775_v60 = vrot.slane %v2773_v46, 5  ;;  %v2779_v51 = vrot.slane %v2777_v47, 4  ;;  %v1638_v44 = vld [vmem:[#allocation2 + $0x44] sm:$0x1] }
  0x98   : > { %4122 = vmatprep.mubr.msk.bf16.mxu0 %vm529_vm2, %v3787_v33  ;;  %v2752_v61 = vsel %vm4617_vm7, %v2747_v52, %v2751_v34  ;;  %v2783_v58 = vshll.u32 %v2594_v20, 16  ;;  %v3799_v7 = vrot.slane %v2985_v31, 9  ;;  %v3035_v8 = vrot.slane %v2986_v48, 5  ;;  %v1641_v37 = vld [vmem:[#allocation2 + $0x50] sm:$0x1] }
  0x99   : > { %4043 = vmatmul.mubr.msk.bf16.vlgmr.msra.gmra.mrb[0].mxu1 %vm529_vm2, %v4349_v39  ;;  %v2762_v1 = vsel %vm4617_vm7, %v2757_v57, %v2761_v53  ;;  %v2770_v2 = vor.u32 %v2769_v59, %v2766_v54  ;;  %v3038_v63 = vrot.slane %v2987_v55, 5  ;;  %v3788_v19 = vcombine.low %v2728_v50, %v2738_v56  ;;  %v2991_v31 = vld [vmem:[#allocation2 + $0x30] sm:$0xe]  ;;  %v2992_v47 = vld [vmem:[#allocation2 + $0x34] sm:$0xf] }
  0x9a   : > { %4046 = vmatprep.mubr.msk.bf16.mxu1 %vm529_vm2, %v4350_v49  ;;  %4149 = vmatpush3.bf16.msra.mxu1 %v4475_v3  ;;  %v2780_v10 = vor.u32 %v2779_v51, %v2775_v60  ;;  %v2785_v13 = vrot.slane %v2783_v58, 5  ;;  %v3789_v16 = vcombine.low %v2752_v61, %v2762_v1  ;;  %v3037_v18 = vrot.slane %v3035_v8, 4  ;;  %v2993_v53 = vld [vmem:[#allocation2 + $0x38] sm:$0x1]  ;;  %v2994_v59 = vld [vmem:[#allocation2 + $0x3c] sm:$0xe] }
  0x9b   : > { %v2771_v17 = vrot.slane %v2770_v2, 4  ;;  %v3042_v45 = vrot.slane %v4919_v0, 5  ;;  %v4929_v21 = vsel %vm4636_vm8, %v3799_v7, %v3035_v8  ;;  %v1745_v24 = vshrl.u32 %v1636_v15, 16  ;;  %v2995_v7 = vld [vmem:[#allocation2 + $0x40] sm:$0xf]  ;;  %v4353_v0 = vld [vmem:[#allocation2 + $0x48] sm:$0xff]  }
  0x9c   : > { %v2781_v62 = vrot.slane %v2780_v10, 4  ;;  %v1748_v23 = vshll.u32 %v1636_v15, 16  ;;  %v3039_v27 = vsel %vm4636_vm8, %v3037_v18, %v3038_v63  ;;  %v3800_v5 = vrot.slane %v2988_v14, 9  ;;  %v1642_v15 = vld [vmem:[#allocation2 + $0x54] sm:$0xf] }
  0x9d   : > { %v2776_v3 = vsel %vm4617_vm7, %v2771_v17, %v2775_v60  ;;  %v3045_v30 = vrot.slane %v2990_v35, 5  ;;  %v1747_v32 = vrot.slane %v1745_v24, 4  ;;  %v3808_v33 = vcombine.low %v4929_v21, %v3039_v27  ;;  %v2996_v17 = vld [vmem:[#allocation2 + $0x44] sm:$0x1]  ;;  %v1643_v21 = vld [vmem:[#allocation2 + $0x58] sm:$0xf] }
  0x9e   : > { %v2786_v29 = vsel %vm4617_vm7, %v2781_v62, %v2785_v13  ;;  %v1750_v40 = vrot.slane %v1748_v23, 5  ;;  %v3044_v43 = vrot.slane %v3042_v45, 4  ;;  %v1754_v34 = vshll.u32 %v1637_v22, 16 }
  0x9f   : > { %4123 = vmatmul.mubr.msk.bf16.gmra.mrb[8].mxu0 %vm529_vm2, %v3788_v19  ;;  %v1758_v6 = vshrl.u32 %v1637_v22, 16  ;;  %v3790_v20 = vcombine.low %v2776_v3, %v2786_v29  ;;  %v1764_v36 = vshll.u32 %v1638_v44, 16  ;;  %v1769_v38 = vshrl.u32 %v1639_v9, 16  ;;  %v4354_v19 = vld [vmem:[#allocation2 + $0x54] sm:$0xff]  }
  0xa0   : > { %4126 = vmatprep.mubr.msk.bf16.mxu0 %vm529_vm2, %v3789_v16  ;;  %v1751_v26 = vor.u32 %v1750_v40, %v1747_v32  ;;  %v1756_v39 = vrot.slane %v1754_v34, 5  ;;  %v1772_v42 = vshll.u32 %v1639_v9, 16  ;;  %v1778_v46 = vshll.u32 %v1640_v11, 16 }
  0xa1   : > { %4047 = vmatmul.mubr.msk.bf16.gmra.mrb[4].mxu1 %vm529_vm2, %v4351_v25  ;;  %v1760_v41 = vrot.slane %v1758_v6, 4  ;;  %v1766_v49 = vrot.slane %v1764_v36, 5  ;;  %v1771_v50 = vrot.slane %v1769_v38, 4  ;;  %v1782_v52 = vshrl.u32 %v1640_v11, 16  ;;  %v1644_v25 = vld [vmem:[#allocation2 + $0x5c] sm:$0x1] }
  0xa2   : > { %4050 = vmatprep.mubr.msk.bf16.mxu1 %vm529_vm2, %v4352_v28  ;;  %v1752_v48 = vrot.slane %v1751_v26, 4  ;;  %v1774_v55 = vrot.slane %v1772_v42, 5  ;;  %v4942_v56 = vrot.slane %v1778_v46, 5  ;;  %v1788_v57 = vshll.u32 %v1641_v37, 16  ;;  %v1645_v28 = vld [vmem:[#allocation2 + $0x60] sm:$0xf] }
  0xa3   : > { %v1761_v54 = vor.u32 %v1760_v41, %v1756_v39  ;;  %v3043_v60 = vsel %vm4636_vm8, %v3800_v5, %v3042_v45  ;;  %v1784_v61 = vrot.slane %v1782_v52, 4  ;;  %v3801_v51 = vrot.slane %v2991_v31, 9  ;;  %v1646_v11 = vld [vmem:[#allocation2 + $0x64] sm:$0xf]  ;;  %v1647_v38 = vld [vmem:[#allocation2 + $0x68] sm:$0x1] }
  0xa4   : > { %v3049_v58 = vrot.slane %v2992_v47, 5  ;;  %v3046_v1 = vsel %vm4636_vm8, %v3044_v43, %v3045_v30  ;;  %v1775_v8 = vor.u32 %v1774_v55, %v1771_v50  ;;  %v3052_v63 = vrot.slane %v2993_v53, 5  ;;  %v4355_v41 = vld [vmem:[#allocation2 + $0x60] sm:$0xff]   ;;  %v3000_v55 = vld [vmem:[#allocation2 + $0x54] sm:$0xe] }
  0xa5   : > { %v1762_v2 = vrot.slane %v1761_v54, 4  ;;  %v1757_v10 = vsel %vm4617_vm7, %v1752_v48, %v1756_v39  ;;  %v1785_v13 = vor.u32 %v1784_v61, %v4942_v56  ;;  %v4952_v14 = vrot.slane %v1788_v57, 5  ;;  %v2998_v39 = vld [vmem:[#allocation2 + $0x4c] sm:$0xf]  ;;  %v3001_v61 = vld [vmem:[#allocation2 + $0x58] sm:$0xf] }
  0xa6   : > { %v3051_v16 = vrot.slane %v3049_v58, 4  ;;  %v4957_v35 = vrot.slane %v1775_v8, 4  ;;  %v3802_v45 = vrot.slane %v2994_v59, 9  ;;  %v3056_v62 = vrot.slane %v2995_v7, 5 }
  0xa7   : > { %4127 = vmatmul.mubr.msk.bf16.gmra.mrb[12].mxu0 %vm529_vm2, %v3790_v20  ;;  %v1767_v18 = vsel %vm4617_vm7, %v1762_v2, %v1766_v49  ;;  %v4959_v22 = vrot.slane %v1785_v13, 4  ;;  %v3050_v24 = vsel %vm4636_vm8, %v3801_v51, %v3049_v58  ;;  %v1793_v3 = vshrl.u32 %v1642_v15, 16  ;;  %v2997_v20 = vld [vmem:[#allocation2 + $0x48] sm:$0xe]  ;;  %v2999_v49 = vld [vmem:[#allocation2 + $0x50] sm:$0x1] }
  0xa8   : > { %4132 = vmatprep.mubr.msk.bf16.mxu0 %vm529_vm2, %v3808_v33  ;;  %v3053_v23 = vsel %vm4636_vm8, %v3051_v16, %v3052_v63  ;;  %v3809_v27 = vcombine.low %v3043_v60, %v3046_v1  ;;  %v3728_v5 = vcombine.low %v1757_v10, %v1767_v18  ;;  %v3058_v44 = vrot.slane %v3056_v62, 4  ;;  %v3002_v1 = vld [vmem:[#allocation2 + $0x5c] sm:$0x1] }
  0xa9   : > { %4051 = vmatmul.mubr.msk.bf16.gmra.mrb[8].mxu1 %vm529_vm2, %v4353_v0  ;;  %v3059_v9 = vrot.slane %v2996_v17, 5  ;;  %v1781_v29 = vsel %vm4617_vm7, %v4957_v35, %v4942_v56  ;;  %v1795_v30 = vrot.slane %v1793_v3, 4  ;;  %v1796_v32 = vshll.u32 %v1642_v15, 16 }
  0xaa   : > { %4054 = vmatprep.mubr.msk.bf16.mxu1 %vm529_vm2, %v4354_v19  ;;  %v1802_v40 = vshll.u32 %v1643_v21, 16  ;;  %v3810_v33 = vcombine.low %v3050_v24, %v3053_v23  ;;  %v3057_v43 = vsel %vm4636_vm8, %v3802_v45, %v3056_v62  ;;  %v1806_v34 = vshrl.u32 %v1643_v21, 16  ;;  %v3003_v19 = vld [vmem:[#allocation2 + $0x60] sm:$0xe]  ;;  %v3004_v62 = vld [vmem:[#allocation2 + $0x64] sm:$0xf] }
  0xab   : > { %v1812_v6 = vshll.u32 %v1644_v25, 16  ;;  %v1791_v26 = vsel %vm4617_vm7, %v4959_v22, %v4952_v14  ;;  %v1798_v36 = vrot.slane %v1796_v32, 5  ;;  %v1817_v31 = vshrl.u32 %v1645_v28, 16  ;;  %v3005_v21 = vld [vmem:[#allocation2 + $0x68] sm:$0x1] }
  0xac   : > { %v1804_v37 = vrot.slane %v1802_v40, 5  ;;  %v3060_v42 = vsel %vm4636_vm8, %v3058_v44, %v3059_v9  ;;  %v1808_v46 = vrot.slane %v1806_v34, 4  ;;  %v1820_v47 = vshll.u32 %v1645_v28, 16  ;;  %v3007_v25 = vld [vmem:[#allocation2 + $0x70] sm:$0xf] }
  0xad   : > { %v1826_v48 = vshll.u32 %v1646_v11, 16  ;;  %v1799_v50 = vor.u32 %v1798_v36, %v1795_v30  ;;  %v1814_v52 = vrot.slane %v1812_v6, 5  ;;  %v1819_v53 = vrot.slane %v1817_v31, 4  ;;  %v3006_v34 = vld [vmem:[#allocation2 + $0x6c] sm:$0xe] }
  0xae   : > { %v1830_v54 = vshrl.u32 %v1646_v11, 16  ;;  %v1809_v56 = vor.u32 %v1808_v46, %v1804_v37  ;;  %v1822_v57 = vrot.slane %v1820_v47, 5  ;;  %v3803_v60 = vrot.slane %v2997_v20, 9  ;;  %v3008_v6 = vld [vmem:[#allocation2 + $0x74] sm:$0x1] }
  0xaf   : > { %4133 = vmatmul.mubr.msk.bf16.vlgmr.msra.gmra.mrb[0].mxu0 %vm529_vm2, %v3809_v27  ;;  %v1828_v59 = vrot.slane %v1826_v48, 5  ;;  %v3811_v51 = vcombine.low %v3057_v43, %v3060_v42  ;;  %v1800_v58 = vrot.slane %v1799_v50, 4  ;;  %v3063_v0 = vrot.slane %v2998_v39, 5 }
  0xb0   : > { %4136 = vmatprep.mubr.msk.bf16.mxu0 %vm529_vm2, %v3810_v33  ;;  %v1832_v7 = vrot.slane %v1830_v54, 4  ;;  %v1810_v2 = vrot.slane %v1809_v56, 4  ;;  %v1823_v8 = vor.u32 %v1822_v57, %v1819_v53  ;;  %v1836_v63 = vshll.u32 %v1647_v38, 16 }
  0xb1   : > { %4055 = vmatmul.mubr.msk.bf16.gmra.mrb[12].mxu1 %vm529_vm2, %v4355_v41  ;;  %v3066_v15 = vrot.slane %v2999_v49, 5  ;;  %v3064_v13 = vsel %vm4636_vm8, %v3803_v60, %v3063_v0  ;;  %v3065_v14 = vrot.slane %v3063_v0, 4  ;;  %v3804_v16 = vrot.slane %v3000_v55, 9 }
  0xb2   : > { %4068 = vmatprep.mubr.msk.bf16.mxu1 %vm529_vm2, %v3728_v5  ;;  %v1833_v10 = vor.u32 %v1832_v7, %v1828_v59  ;;  %v1805_v17 = vsel %vm4617_vm7, %v1800_v58, %v1804_v37  ;;  %v1815_v18 = vsel %vm4617_vm7, %v1810_v2, %v1814_v52  ;;  %v3070_v35 = vrot.slane %v3001_v61, 5 }
  0xb3   : > { %v3073_v45 = vrot.slane %v3002_v1, 5  ;;  %v3729_v22 = vcombine.low %v1781_v29, %v1791_v26  ;;  %v3067_v24 = vsel %vm4636_vm8, %v3065_v14, %v3066_v15  ;;  %v3805_v23 = vrot.slane %v3003_v19, 9 }
  0xb4   : > { %v1824_v3 = vrot.slane %v1823_v8, 4  ;;  %v1838_v27 = vrot.slane %v1836_v63, 5  ;;  %v3812_v5 = vcombine.low %v3064_v13, %v3067_v24  ;;  %v3072_v44 = vrot.slane %v3070_v35, 4 }
  0xb5   : > { %v3730_v9 = vcombine.low %v1805_v17, %v1815_v18  ;;  %v1834_v28 = vrot.slane %v1833_v10, 4  ;;  %v3077_v30 = vrot.slane %v3004_v62, 5  ;;  %v3080_v32 = vrot.slane %v3005_v21, 5 }
  0xb6   : > { %v3071_v29 = vsel %vm4636_vm8, %v3804_v16, %v3070_v35  ;;  %v3074_v40 = vsel %vm4636_vm8, %v3072_v44, %v3073_v45  ;;  %v3084_v11 = vrot.slane %v3007_v25, 5  ;;  %v1829_v20 = vsel %vm4617_vm7, %v1824_v3, %v1828_v59 }
  0xb7   : > { %4137 = vmatmul.mubr.msk.bf16.gmra.mrb[4].mxu0 %vm529_vm2, %v3811_v51  ;;  %v3078_v33 = vsel %vm4636_vm8, %v3805_v23, %v3077_v30  ;;  %v3079_v43 = vrot.slane %v3077_v30, 4  ;;  %v1839_v26 = vsel %vm4617_vm7, %v1834_v28, %v1838_v27  ;;  %v3813_v36 = vcombine.low %v3071_v29, %v3074_v40 }
  0xb8   : > { %4140 = vmatprep.mubr.msk.bf16.mxu0 %vm529_vm2, %v3812_v5  ;;  %v3806_v31 = vrot.slane %v3006_v34, 9  ;;  %v3086_v39 = vrot.slane %v3084_v11, 4  ;;  %v3087_v41 = vrot.slane %v3008_v6, 5  ;;  %v3731_v42 = vcombine.low %v1829_v20, %v1839_v26 }
  0xb9   : > { %4069 = vmatmul.mubr.msk.bf16.vlgmr.msra.gmra.mrb[8].mxu1 %vm529_vm2, %v3729_v22  ;;  %v3081_v37 = vsel %vm4636_vm8, %v3079_v43, %v3080_v32 }
  0xba   : > { %4072 = vmatprep.mubr.msk.bf16.mxu1 %vm529_vm2, %v3730_v9  ;;  %v3814_v38 = vcombine.low %v3078_v33, %v3081_v37  ;;  %v3085_v46 = vsel %vm4636_vm8, %v3806_v31, %v3084_v11  ;;  %v3088_v12 = vsel %vm4636_vm8, %v3086_v39, %v3087_v41 }
  0xbb   : > { %v3815_v47 = vcombine.low %v3085_v46, %v3088_v12 }
  0xbf   : > { %4141 = vmatmul.mubr.msk.bf16.gmra.mrb[8].mxu0 %vm529_vm2, %v3813_v36 }
  0xc0   : > { %4144 = vmatprep.mubr.msk.bf16.mxu0 %vm529_vm2, %v3814_v38 }
  0xc1   : > { %4073 = vmatmul.mubr.msk.bf16.gmra.mrb[12].mxu1 %vm529_vm2, %v3731_v42 }
  0xc7   : > { %4145 = vmatmul.mubr.msk.bf16.gmra.mrb[12].mxu0 %vm529_vm2, %v3815_v47 }
 0x16c   : > { %v4044_v48 = vpop.f32.mrb[0].mxu1 }
 0x16d   : > { %v1513_v49 = vpop.f32.mrb[1].mxu1 }
 0x16e   : > { %v4045_v50 = vpop.f32.mrb[2].mxu1 }
 0x16f   : > { %v1516_v52 = vpop.f32.mrb[3].mxu1 }
 0x174   : > { %v4048_v53 = vpop.f32.mrb[4].mxu1 }
 0x175   : > { %v1529_v54 = vpop.f32.mrb[5].mxu1 }
 0x176   : > { %v4049_v55 = vpop.f32.mrb[6].mxu1 }
 0x177   : > { %v1532_v56 = vpop.f32.mrb[7].mxu1 }
 0x182   : > { %v4134_v4 = vpop.f32.mrb[0].mxu0 }
 0x183   : > { %v4150_v57 = vadd.f32 %v4134_v4, %v4044_v48  ;;  %v3176_v59 = vpop.f32.mrb[1].mxu0 }
 0x184   : > { %v4151_v60 = vadd.f32 %v3176_v59, %v1513_v49  ;;  %v4135_v61 = vpop.f32.mrb[2].mxu0 }
 0x185   : > { %v4152_v51 = vadd.f32 %v4135_v61, %v4045_v50  ;;  %v3179_v58 = vpop.f32.mrb[3].mxu0  ;;  %v3406_v15 = vmul.f32 %v4150_v57, %v4150_v57 }
 0x186   : > { %v4153_v7 = vadd.f32 %v3179_v58, %v1516_v52  ;;  %v3404_v1 = vmul.f32 %v4151_v60, %v4151_v60 }
 0x187   : > { %v3866_v0 = vpack.c.bf16 %v4152_v51, %v4150_v57  ;;  %v3407_v17 = vmul.f32 %v4152_v51, %v4152_v51 }
 0x188   : > { %v3861_v2 = vpack.c.bf16 %v4153_v7, %v4151_v60  ;;  %v3383_v8 = vadd.f32 %v4153_v7, %v4151_v60  ;;  %v3405_v63 = vmul.f32 %v4153_v7, %v4153_v7 }
 0x189   : > { %3898 = vst [vmem:[%s5024_s27 + $0x8] sm:$0xff] %v3866_v0  }
 0x18a   : > { %3862 = vst [vmem:[%s5024_s27] sm:$0xff] %v3861_v2   ;;  %v3384_v19 = vadd.f32 %v4150_v57, %v3383_v8  ;;  %v3420_v10 = vadd.f32 %v3405_v63, %v3404_v1  ;;  %v4138_v13 = vpop.f32.mrb[4].mxu0 }
 0x18b   : > { %v4154_v14 = vadd.f32 %v4138_v13, %v4048_v53  ;;  %v3192_v16 = vpop.f32.mrb[5].mxu0 }
 0x18c   : > { %v3421_v18 = vadd.f32 %v3420_v10, %v3406_v15  ;;  %v4155_v35 = vadd.f32 %v3192_v16, %v1529_v54  ;;  %v3385_v45 = vadd.f32 %v4152_v51, %v3384_v19  ;;  %v4139_v62 = vpop.f32.mrb[6].mxu0  ;;  %v4070_v21 = vpop.f32.mrb[8].mxu1 }
 0x18d   : > { %v4156_v22 = vadd.f32 %v4139_v62, %v4049_v55  ;;  %v3195_v24 = vpop.f32.mrb[7].mxu0  ;;  %v1959_v23 = vpop.f32.mrb[9].mxu1  ;;  %v3410_v11 = vmul.f32 %v4154_v14, %v4154_v14 }
 0x18e   : > { %v3386_v25 = vadd.f32 %v4155_v35, %v3385_v45  ;;  %v3408_v3 = vmul.f32 %v4155_v35, %v4155_v35  ;;  %v3422_v27 = vadd.f32 %v3421_v18, %v3407_v17  ;;  %v4157_v5 = vadd.f32 %v3195_v24, %v1532_v56  ;;  %v4071_v44 = vpop.f32.mrb[10].mxu1 }
 0x18f   : > { %v3876_v9 = vpack.c.bf16 %v4156_v22, %v4154_v14  ;;  %v1962_v30 = vpop.f32.mrb[11].mxu1  ;;  %v3411_v26 = vmul.f32 %v4156_v22, %v4156_v22 }
 0x190   : > { %v3423_v28 = vadd.f32 %v3422_v27, %v3408_v3  ;;  %v3871_v32 = vpack.c.bf16 %v4157_v5, %v4155_v35  ;;  %v3387_v29 = vadd.f32 %v4157_v5, %v3386_v25  ;;  %v3409_v40 = vmul.f32 %v4157_v5, %v4157_v5 }
 0x191   : > { %3900 = vst [vmem:[%s5024_s27 + $0x18] sm:$0xff] %v3876_v9  }
 0x192   : > { %3899 = vst [vmem:[%s5024_s27 + $0x10] sm:$0xff] %v3871_v32   ;;  %v3388_v33 = vadd.f32 %v4154_v14, %v3387_v29  ;;  %v3424_v43 = vadd.f32 %v3423_v28, %v3409_v40  ;;  %v4142_v34 = vpop.f32.mrb[8].mxu0 }
 0x193   : > { %v4158_v6 = vadd.f32 %v4142_v34, %v4070_v21  ;;  %v3208_v20 = vpop.f32.mrb[9].mxu0 }
 0x194   : > { %v3425_v36 = vadd.f32 %v3424_v43, %v3410_v11  ;;  %v4159_v37 = vadd.f32 %v3208_v20, %v1959_v23  ;;  %v3389_v38 = vadd.f32 %v4156_v22, %v3388_v33  ;;  %v4143_v31 = vpop.f32.mrb[10].mxu0  ;;  %v4074_v39 = vpop.f32.mrb[12].mxu1 }
 0x195   : > { %v4160_v41 = vadd.f32 %v4143_v31, %v4071_v44  ;;  %v3211_v42 = vpop.f32.mrb[11].mxu0  ;;  %v1975_v46 = vpop.f32.mrb[13].mxu1  ;;  %v3414_v57 = vmul.f32 %v4158_v6, %v4158_v6 }
 0x196   : > { %v3390_v12 = vadd.f32 %v4159_v37, %v3389_v38  ;;  %v3412_v47 = vmul.f32 %v4159_v37, %v4159_v37  ;;  %v3426_v48 = vadd.f32 %v3425_v36, %v3411_v26  ;;  %v4161_v49 = vadd.f32 %v3211_v42, %v1962_v30  ;;  %v4075_v50 = vpop.f32.mrb[14].mxu1 }
 0x197   : > { %v3886_v52 = vpack.c.bf16 %v4160_v41, %v4158_v6  ;;  %v1978_v54 = vpop.f32.mrb[15].mxu1  ;;  %v3415_v7 = vmul.f32 %v4160_v41, %v4160_v41 }
 0x198   : > { %v3427_v53 = vadd.f32 %v3426_v48, %v3412_v47  ;;  %v3881_v55 = vpack.c.bf16 %v4161_v49, %v4159_v37  ;;  %v3391_v56 = vadd.f32 %v4161_v49, %v3390_v12  ;;  %v3413_v4 = vmul.f32 %v4161_v49, %v4161_v49 }
 0x199   : > { %3902 = vst [vmem:[%s5024_s27 + $0x28] sm:$0xff] %v3886_v52  }
 0x19a   : > { %3901 = vst [vmem:[%s5024_s27 + $0x20] sm:$0xff] %v3881_v55   ;;  %v3392_v59 = vadd.f32 %v4158_v6, %v3391_v56  ;;  %v3428_v60 = vadd.f32 %v3427_v53, %v3413_v4  ;;  %v4146_v61 = vpop.f32.mrb[12].mxu0 }
 0x19b   : > { %v4162_v51 = vadd.f32 %v4146_v61, %v4074_v39  ;;  %v3224_v58 = vpop.f32.mrb[13].mxu0 }
 0x19c   : > { %v3429_v0 = vadd.f32 %v3428_v60, %v3414_v57  ;;  %v4163_v1 = vadd.f32 %v3224_v58, %v1975_v46  ;;  %v3393_v2 = vadd.f32 %v4160_v41, %v3392_v59  ;;  %v4147_v8 = vpop.f32.mrb[14].mxu0 }
 0x19d   : > { %v4164_v63 = vadd.f32 %v4147_v8, %v4075_v50  ;;  %v3227_v15 = vpop.f32.mrb[15].mxu0  ;;  %v3418_v62 = vmul.f32 %v4162_v51, %v4162_v51 }
 0x19e   : > { %v3394_v19 = vadd.f32 %v4163_v1, %v3393_v2  ;;  %v3416_v10 = vmul.f32 %v4163_v1, %v4163_v1  ;;  %v3430_v13 = vadd.f32 %v3429_v0, %v3415_v7  ;;  %v4165_v14 = vadd.f32 %v3227_v15, %v1978_v54 }
 0x19f   : > { %v3896_v16 = vpack.c.bf16 %v4164_v63, %v4162_v51  ;;  %v3419_v24 = vmul.f32 %v4164_v63, %v4164_v63 }
 0x1a0   : > { %v3431_v17 = vadd.f32 %v3430_v13, %v3416_v10  ;;  %v3891_v18 = vpack.c.bf16 %v4165_v14, %v4163_v1  ;;  %v3395_v35 = vadd.f32 %v4165_v14, %v3394_v19  ;;  %v3417_v45 = vmul.f32 %v4165_v14, %v4165_v14 }
 0x1a1   : > { %3904 = vst [vmem:[%s5024_s27 + $0x38] sm:$0xff] %v3896_v16  }
 0x1a2   : > { %3903 = vst [vmem:[%s5024_s27 + $0x30] sm:$0xff] %v3891_v18   ;;  %v3396_v21 = vadd.f32 %v4162_v51, %v3395_v35  ;;  %v3432_v22 = vadd.f32 %v3431_v17, %v3417_v45 }
 0x1a4   : > { %v3397_v23 = vadd.f32 %v4164_v63, %v3396_v21  ;;  %v3433_v25 = vadd.f32 %v3432_v22, %v3418_v62 }
 0x1a6   : > { %v3398_v3 = vrot.slane %v3397_v23, 4  ;;  %v3434_v27 = vadd.f32 %v3433_v25, %v3419_v24 }
 0x1a8   : > { %v3399_v5 = vadd.f32 %v3398_v3, %v3397_v23  ;;  %v3435_v44 = vrot.slane %v3434_v27, 4 }
 0x1aa   : > { %v3400_v9 = vrot.slane %v3399_v5, 2  ;;  %v3436_v28 = vadd.f32 %v3435_v44, %v3434_v27 }
 0x1ac   : > { %v3401_v30 = vadd.f32 %v3400_v9, %v3399_v5  ;;  %v3437_v32 = vrot.slane %v3436_v28, 2 }
 0x1ae   : > { %v3402_v29 = vrot.slane %v3401_v30, 1  ;;  %v3438_v40 = vadd.f32 %v3437_v32, %v3436_v28 }
 0x1b0   : > { %v3439_v11 = vrot.slane %v3438_v40, 1  ;;  %v3403_v33 = vadd.f32 %v3402_v29, %v3401_v30 }
 0x1b2   : > { %v3440_v43 = vadd.f32 %v3439_v11, %v3438_v40 }
 0x1b4   : > { %v3442_v34 = vsel %vm3441_vm9, %v3403_v33, %v3440_v43 }
 0x1b5   : > { %3443 = vst [vmem:[%s407_s29] sm:$0x3] %v3442_v34 }
 0x1b6 PF: > { %s16_s22 = sadd.s32 1, %s4395_s22   ;;  %s5066_s18 = smov %s4387_s20 }
 0x1b7   : > { %p13_p10 = scmp.ge.s32.totalorder %s16_s22, 6   ;;  %s5067_s19 = smov %s4391_s21 }
 0x1b8   : > { %s5068_s20 = smov %s5071_s23  ;;  %s5069_s21 = smov %s5075_s24 }
 0x1b9   :  { %15 = sbr.rel (!%p13_p10) target bundleno = 3 (0x3), region = 96 }

</bundles_post_ra>
